<compile_context>
chip_gen: v6e
topology: v6e:2x2x1
jax: 0.10.0
libtpu: 0.0.40
codegen_flags: <defaults>
</compile_context>

<pallas_src>
from functools import partial

import jax
import jax.numpy as jnp
from jax.experimental import pallas as pl
from jax.experimental.pallas import tpu as pltpu


LATENT_DIM = 20
HIDDEN_DIM = 400
OUT_DIM = 784

LATENT_PAD = 128   # 20  -> 128 (lane-dense z / w1-K)
HIDDEN_PAD = 512   # 400 -> 4 * 128 (lane-dense hidden)


def _round_up(x, m):
    return (x + m - 1) // m * m


def _epilogue_dtype():
    """bf16 bias/ReLU epilogue on chips with a bf16 VPU (v6e/v7x); f32 otherwise."""
    try:
        kind = jax.devices()[0].device_kind.lower()
    except Exception:
        return jnp.float32
    for tag in ("v2", "v3", "v4", "v5"):
        if tag in kind:
            return jnp.float32
    return jnp.bfloat16


def decoder_kernel(z_ref, w1_ref, b1_ref, w2_ref, b2_ref, w3_ref, b3_ref, out_ref,
                   *, ep_dtype):
    # fc1 + ReLU: bf16 inputs, f32 MXU accumulation, bias/ReLU in ep_dtype.
    h = jnp.dot(z_ref[...], w1_ref[...], preferred_element_type=jnp.float32)
    h = jnp.maximum(h.astype(ep_dtype) + b1_ref[...], 0.0)
    # fc2 + ReLU
    h = jnp.dot(h.astype(jnp.bfloat16), w2_ref[...],
                preferred_element_type=jnp.float32)
    h = jnp.maximum(h.astype(ep_dtype) + b2_ref[...], 0.0)
    # fc3 (raw logits, no activation) -> bf16 store, lane-dense 784-wide output.
    logits = jnp.dot(h.astype(jnp.bfloat16), w3_ref[...],
                     preferred_element_type=jnp.float32)
    out_ref[...] = (logits.astype(ep_dtype) + b3_ref[...]).astype(out_ref.dtype)


def decoder_forward(z, w1, b1, w2, b2, w3, b3, *, tm=512):
    """z: [B, LATENT_DIM] f32. Weights are padded [in, out] bf16, biases [1, out] f32.
    Returns bf16 logits of shape [B, 784]."""
    B, L = z.shape
    LP = w1.shape[0]   # 128
    HP = w2.shape[0]   # 512
    OUT = w3.shape[1]  # 784

    ep_dtype = _epilogue_dtype()

    # Batch tile: multiple of 8 sublanes, capped at the (padded) batch size, and
    # capped again so the parallel batch axis has >=2 grid steps (v7x: 2 TCs).
    pB8 = _round_up(B, 8)
    TM = min(tm, pB8)
    if pB8 >= 16:
        TM = min(TM, _round_up((pB8 + 1) // 2, 8))
    pB = _round_up(B, TM)

    # Pad batch + latent (20 -> 128) and cast to bf16 in one fused wrapper op.
    z_p = jnp.pad(z, ((0, pB - B), (0, LP - L))).astype(jnp.bfloat16)

    # Biases in the epilogue dtype (tiny one-time casts).
    b1e = b1.astype(ep_dtype)
    b2e = b2.astype(ep_dtype)
    b3e = b3.astype(ep_dtype)

    flops = 2 * pB * (LP * HP + HP * HP + HP * OUT)
    bytes_accessed = (
        (LP * HP + HP * HP + HP * OUT) * 2          # bf16 weights
        + (HP + HP + OUT) * b1e.dtype.itemsize      # biases
        + pB * LP * 2                               # bf16 z in
        + pB * OUT * 2                              # bf16 logits out
    )

    out = pl.pallas_call(
        partial(decoder_kernel, ep_dtype=ep_dtype),
        out_shape=jax.ShapeDtypeStruct((pB, OUT), jnp.bfloat16),
        grid=(pB // TM,),
        in_specs=[
            pl.BlockSpec((TM, LP), lambda i: (i, 0)),    # z: batch-tiled
            pl.BlockSpec((LP, HP), lambda i: (0, 0)),    # weights/biases: resident
            pl.BlockSpec((1, HP), lambda i: (0, 0)),
            pl.BlockSpec((HP, HP), lambda i: (0, 0)),
            pl.BlockSpec((1, HP), lambda i: (0, 0)),
            pl.BlockSpec((HP, OUT), lambda i: (0, 0)),
            pl.BlockSpec((1, OUT), lambda i: (0, 0)),
        ],
        # Output block spans the full (unpadded) 784-wide last dim: no post-kernel
        # column slice, no extra HBM pass.
        out_specs=pl.BlockSpec((TM, OUT), lambda i: (i, 0)),
        compiler_params=pltpu.CompilerParams(
            dimension_semantics=("parallel",),
        ),
        cost_estimate=pl.CostEstimate(
            flops=flops, transcendentals=0, bytes_accessed=bytes_accessed),
    )(z_p, w1, b1e, w2, b2e, w3, b3e)

    if pB != B:
        out = out[:B]   # row-only slice; no-op when B is already a multiple of TM
    return out


def init_params(key):
    """PyTorch-Linear-like uniform fan-in init, then pad + bf16-cast weights.
    Padded rows/cols are zero, so padded hidden units are exactly 0 after ReLU."""
    k1, k2, k3, k4, k5, k6 = jax.random.split(key, 6)

    def uniform(k, shape, fan_in):
        bound = 1.0 / jnp.sqrt(float(fan_in))
        return jax.random.uniform(k, shape, jnp.float32, -bound, bound)

    w1 = uniform(k1, (LATENT_DIM, HIDDEN_DIM), LATENT_DIM)   # fc1.weight.T
    b1 = uniform(k2, (1, HIDDEN_DIM), LATENT_DIM)            # fc1.bias
    w2 = uniform(k3, (HIDDEN_DIM, HIDDEN_DIM), HIDDEN_DIM)   # fc2.weight.T
    b2 = uniform(k4, (1, HIDDEN_DIM), HIDDEN_DIM)            # fc2.bias
    w3 = uniform(k5, (HIDDEN_DIM, OUT_DIM), HIDDEN_DIM)      # fc3.weight.T
    b3 = uniform(k6, (1, OUT_DIM), HIDDEN_DIM)               # fc3.bias

    def pad2(a, rows, cols):
        return jnp.pad(a, ((0, rows - a.shape[0]), (0, cols - a.shape[1])))

    w1p = pad2(w1, LATENT_PAD, HIDDEN_PAD).astype(jnp.bfloat16)
    b1p = pad2(b1, 1, HIDDEN_PAD)                       # biases stay f32 here;
    w2p = pad2(w2, HIDDEN_PAD, HIDDEN_PAD).astype(jnp.bfloat16)
    b2p = pad2(b2, 1, HIDDEN_PAD)                       # wrapper casts per-chip
    w3p = pad2(w3, HIDDEN_PAD, OUT_DIM).astype(jnp.bfloat16)   # N stays 784
    b3p = b3                                            # (1, 784)
    return w1p, b1p, w2p, b2p, w3p, b3p


def reference_forward(z, w1, b1, w2, b2, w3, b3, ep_dtype):
    """Pure-JAX reference mirroring the kernel precision (bf16 matmul inputs,
    f32 accumulation, ep_dtype bias/ReLU, bf16 output)."""
    LP = w1.shape[0]
    zp = jnp.pad(z, ((0, 0), (0, LP - z.shape[1]))).astype(jnp.bfloat16)
    h = jnp.dot(zp, w1, preferred_element_type=jnp.float32)
    h = jnp.maximum(h.astype(ep_dtype) + b1.astype(ep_dtype), 0.0)
    h = jnp.dot(h.astype(jnp.bfloat16), w2, preferred_element_type=jnp.float32)
    h = jnp.maximum(h.astype(ep_dtype) + b2.astype(ep_dtype), 0.0)
    out = jnp.dot(h.astype(jnp.bfloat16), w3, preferred_element_type=jnp.float32)
    return (out.astype(ep_dtype) + b3.astype(ep_dtype)).astype(jnp.bfloat16)


if __name__ == "__main__":
    key = jax.random.PRNGKey(0)
    kz, kp = jax.random.split(key)

    B = 8
    z = jax.random.normal(kz, (B, LATENT_DIM), jnp.float32)
    params = init_params(kp)

    out = decoder_forward(z, *params)
    out = jax.block_until_ready(out)

    ref = reference_forward(z, *params, _epilogue_dtype())
    assert out.shape == (B, OUT_DIM), out.shape
    assert out.dtype == jnp.bfloat16, out.dtype
    assert jnp.allclose(out.astype(jnp.float32), ref.astype(jnp.float32),
                        atol=3e-2, rtol=3e-2), "mismatch vs reference"

    print("KERNEL_OK")
</pallas_src>

<mosaic_0001>
module attributes {stable_mosaic.version = 11 : i64} {
  func.func @decoder_kernel(%arg0: i32, %arg1: memref<8x128xbf16, #tpu.memory_space<vmem>>, %arg2: memref<128x512xbf16, #tpu.memory_space<vmem>>, %arg3: memref<1x512xbf16, #tpu.memory_space<vmem>>, %arg4: memref<512x512xbf16, #tpu.memory_space<vmem>>, %arg5: memref<1x512xbf16, #tpu.memory_space<vmem>>, %arg6: memref<512x784xbf16, #tpu.memory_space<vmem>>, %arg7: memref<1x784xbf16, #tpu.memory_space<vmem>>, %arg8: memref<8x784xbf16, #tpu.memory_space<vmem>>) attributes {dimension_semantics = [#tpu.dimension_semantics<parallel>], iteration_bounds = array<i64: 1>, scalar_prefetch = 0 : i64, scratch_operands = 0 : i64, tpu.core_type = #tpu.core_type<tc>, window_params = [{transform_indices = @transform_0, window_bounds = array<i64: 8, 128>}, {pipeline_mode = #tpu.pipeline_mode<synchronous>, transform_indices = @transform_1, window_bounds = array<i64: 128, 512>}, {pipeline_mode = #tpu.pipeline_mode<synchronous>, transform_indices = @transform_2, window_bounds = array<i64: 1, 512>}, {pipeline_mode = #tpu.pipeline_mode<synchronous>, transform_indices = @transform_3, window_bounds = array<i64: 512, 512>}, {pipeline_mode = #tpu.pipeline_mode<synchronous>, transform_indices = @transform_4, window_bounds = array<i64: 1, 512>}, {pipeline_mode = #tpu.pipeline_mode<synchronous>, transform_indices = @transform_5, window_bounds = array<i64: 512, 784>}, {pipeline_mode = #tpu.pipeline_mode<synchronous>, transform_indices = @transform_6, window_bounds = array<i64: 1, 784>}, {transform_indices = @transform_7, window_bounds = array<i64: 8, 784>}]} {
    %c0 = arith.constant 0 : index
    %c0_0 = arith.constant 0 : index
    %0 = vector.load %arg1[%c0, %c0_0] : memref<8x128xbf16, #tpu.memory_space<vmem>>, vector<8x128xbf16>
    %c0_1 = arith.constant 0 : index
    %c0_2 = arith.constant 0 : index
    %1 = vector.load %arg2[%c0_1, %c0_2] : memref<128x512xbf16, #tpu.memory_space<vmem>>, vector<128x512xbf16>
    %cst = arith.constant dense<0.000000e+00> : vector<8x512xf32>
    %2 = tpu.matmul %0, %1, %cst {dimension_numbers = #tpu.dot_dimension_numbers<[1], [0], [0], [1], [0, 0, 1, 1], [], []>} : vector<8x128xbf16>, vector<128x512xbf16>, vector<8x512xf32> -> vector<8x512xf32>
    %3 = arith.truncf %2 : vector<8x512xf32> to vector<8x512xbf16>
    %c0_3 = arith.constant 0 : index
    %c0_4 = arith.constant 0 : index
    %4 = vector.load %arg3[%c0_3, %c0_4] : memref<1x512xbf16, #tpu.memory_space<vmem>>, vector<1x512xbf16>
    %5 = vector.broadcast %4 : vector<1x512xbf16> to vector<8x512xbf16>
    %6 = arith.addf %3, %5 : vector<8x512xbf16>
    %cst_5 = arith.constant 0.000000e+00 : bf16
    %7 = vector.broadcast %cst_5 : bf16 to vector<8x512xbf16>
    %8 = arith.maximumf %6, %7 : vector<8x512xbf16>
    %c0_6 = arith.constant 0 : index
    %c0_7 = arith.constant 0 : index
    %9 = vector.load %arg4[%c0_6, %c0_7] : memref<512x512xbf16, #tpu.memory_space<vmem>>, vector<512x512xbf16>
    %cst_8 = arith.constant dense<0.000000e+00> : vector<8x512xf32>
    %10 = tpu.matmul %8, %9, %cst_8 {dimension_numbers = #tpu.dot_dimension_numbers<[1], [0], [0], [1], [0, 0, 1, 1], [], []>} : vector<8x512xbf16>, vector<512x512xbf16>, vector<8x512xf32> -> vector<8x512xf32>
    %11 = arith.truncf %10 : vector<8x512xf32> to vector<8x512xbf16>
    %c0_9 = arith.constant 0 : index
    %c0_10 = arith.constant 0 : index
    %12 = vector.load %arg5[%c0_9, %c0_10] : memref<1x512xbf16, #tpu.memory_space<vmem>>, vector<1x512xbf16>
    %13 = vector.broadcast %12 : vector<1x512xbf16> to vector<8x512xbf16>
    %14 = arith.addf %11, %13 : vector<8x512xbf16>
    %cst_11 = arith.constant 0.000000e+00 : bf16
    %15 = vector.broadcast %cst_11 : bf16 to vector<8x512xbf16>
    %16 = arith.maximumf %14, %15 : vector<8x512xbf16>
    %c0_12 = arith.constant 0 : index
    %c0_13 = arith.constant 0 : index
    %17 = vector.load %arg6[%c0_12, %c0_13] : memref<512x784xbf16, #tpu.memory_space<vmem>>, vector<512x784xbf16>
    %cst_14 = arith.constant dense<0.000000e+00> : vector<8x784xf32>
    %18 = tpu.matmul %16, %17, %cst_14 {dimension_numbers = #tpu.dot_dimension_numbers<[1], [0], [0], [1], [0, 0, 1, 1], [], []>} : vector<8x512xbf16>, vector<512x784xbf16>, vector<8x784xf32> -> vector<8x784xf32>
    %19 = arith.truncf %18 : vector<8x784xf32> to vector<8x784xbf16>
    %c0_15 = arith.constant 0 : index
    %c0_16 = arith.constant 0 : index
    %20 = vector.load %arg7[%c0_15, %c0_16] : memref<1x784xbf16, #tpu.memory_space<vmem>>, vector<1x784xbf16>
    %21 = vector.broadcast %20 : vector<1x784xbf16> to vector<8x784xbf16>
    %22 = arith.addf %19, %21 : vector<8x784xbf16>
    %c0_17 = arith.constant 0 : index
    %c0_18 = arith.constant 0 : index
    %23 = vector.load %arg8[%c0_17, %c0_18] : memref<8x784xbf16, #tpu.memory_space<vmem>>, vector<8x784xbf16>
    tpu.vector_store %arg8[%c0_17, %c0_18], %22 {strides = array<i32>} : memref<8x784xbf16, #tpu.memory_space<vmem>>, vector<8x784xbf16>,
    return
  }
  func.func @transform_0(%arg0: i32) -> (i32, i32) {
    %c0_i32 = arith.constant 0 : i32
    %c0_i32_0 = arith.constant 0 : i32
    return %arg0, %c0_i32 : i32, i32
  }
  func.func @transform_1(%arg0: i32) -> (i32, i32) {
    %c0_i32 = arith.constant 0 : i32
    %c0_i32_0 = arith.constant 0 : i32
    %c0_i32_1 = arith.constant 0 : i32
    return %c0_i32, %c0_i32_0 : i32, i32
  }
  func.func @transform_2(%arg0: i32) -> (i32, i32) {
    %c0_i32 = arith.constant 0 : i32
    %c0_i32_0 = arith.constant 0 : i32
    %c0_i32_1 = arith.constant 0 : i32
    return %c0_i32, %c0_i32_0 : i32, i32
  }
  func.func @transform_3(%arg0: i32) -> (i32, i32) {
    %c0_i32 = arith.constant 0 : i32
    %c0_i32_0 = arith.constant 0 : i32
    %c0_i32_1 = arith.constant 0 : i32
    return %c0_i32, %c0_i32_0 : i32, i32
  }
  func.func @transform_4(%arg0: i32) -> (i32, i32) {
    %c0_i32 = arith.constant 0 : i32
    %c0_i32_0 = arith.constant 0 : i32
    %c0_i32_1 = arith.constant 0 : i32
    return %c0_i32, %c0_i32_0 : i32, i32
  }
  func.func @transform_5(%arg0: i32) -> (i32, i32) {
    %c0_i32 = arith.constant 0 : i32
    %c0_i32_0 = arith.constant 0 : i32
    %c0_i32_1 = arith.constant 0 : i32
    return %c0_i32, %c0_i32_0 : i32, i32
  }
  func.func @transform_6(%arg0: i32) -> (i32, i32) {
    %c0_i32 = arith.constant 0 : i32
    %c0_i32_0 = arith.constant 0 : i32
    %c0_i32_1 = arith.constant 0 : i32
    return %c0_i32, %c0_i32_0 : i32, i32
  }
  func.func @transform_7(%arg0: i32) -> (i32, i32) {
    %c0_i32 = arith.constant 0 : i32
    %c0_i32_0 = arith.constant 0 : i32
    return %arg0, %c0_i32 : i32, i32
  }
}

</mosaic_0001>

<bundles_post_ra>
// kernel: tpu_custom_call.1
= control target key start
LH: loop header
LB: loop body
LE: loop exit
PB: predicated region body
PF: predicated region fallthrough
CT: control target
= control target key end

     0   :  { %v4275_v2 = vmov 0   ;;  %s5568_s0 = inlined_call_operand.vmem [shape: bf16[8,128], index: 0, kind: input, shape index: {}]   ;;  %s5569_s1 = inlined_call_operand.vmem [shape: bf16[128,512], index: 1, kind: input, shape index: {}]   ;;  %s5570_s2 = inlined_call_operand.vmem [shape: bf16[1,512], index: 2, kind: input, shape index: {}]   ;;  %s5571_s3 = inlined_call_operand.vmem [shape: bf16[512,512], index: 3, kind: input, shape index: {}]   ;;  %s5572_s4 = inlined_call_operand.vmem [shape: bf16[1,512], index: 4, kind: input, shape index: {}]   ;;  %s5573_s5 = inlined_call_operand.vmem [shape: bf16[512,784], index: 5, kind: input, shape index: {}]   ;;  %s5574_s6 = inlined_call_operand.vmem [shape: bf16[1,784], index: 6, kind: input, shape index: {}]   ;;  %s5575_s7 = inlined_call_operand.hbm [shape: bf16[8,784], index: 7, kind: output, shape index: {}]  }
   0x1   :  { %v3692_v0 = vld [vmem:[%s5569_s1 + $0xe4] ss:$16 sps:$4 sm:$0xff]   ;;  %v3694_v1 = vld [vmem:[%s5569_s1 + $0xec] ss:$16 sps:$4 sm:$0xff]   ;;  %253 = vmatprep.mubr.bf16.mxu0 %v4275_v2  ;;  %294 = vmatprep.mubr.bf16.mxu1 %v4275_v2  ;;  %v3696_v3 = vld [vmem:[%s5569_s1 + $0xe0] ss:$16 sps:$4 sm:$0xff]  }
   0x2   :  { %221 = vmatprep.subr.bf16.mxu0 %v3692_v0  ;;  %v3697_v4 = vld [vmem:[%s5569_s1 + $0xe8] ss:$16 sps:$4 sm:$0xff]   ;;  %262 = vmatprep.subr.bf16.mxu1 %v3694_v1  ;;  %v3698_v5 = vld [vmem:[%s5569_s1 + $0xc4] ss:$16 sps:$4 sm:$0xff]   ;;  %v3700_v6 = vld [vmem:[%s5569_s1 + $0xcc] ss:$16 sps:$4 sm:$0xff]  }
   0x3   :  { %222 = vmatpush1.bf16.msra.mxu0 %v3696_v3  ;;  %263 = vmatpush1.bf16.msra.mxu1 %v3697_v4  ;;  %v3702_v7 = vld [vmem:[%s5569_s1 + $0xc0] ss:$16 sps:$4 sm:$0xff]   ;;  %v3703_v8 = vld [vmem:[%s5569_s1 + $0xc8] ss:$16 sps:$4 sm:$0xff]   ;;  %v3704_v9 = vld [vmem:[%s5569_s1 + $0xa4] ss:$16 sps:$4 sm:$0xff]  }
   0x4   :  { %223 = vmatprep.subr.bf16.mxu0 %v3698_v5  ;;  %264 = vmatprep.subr.bf16.mxu1 %v3700_v6  ;;  %v3706_v10 = vld [vmem:[%s5569_s1 + $0xac] ss:$16 sps:$4 sm:$0xff]   ;;  %v3708_v11 = vld [vmem:[%s5569_s1 + $0xa0] ss:$16 sps:$4 sm:$0xff]   ;;  %v3709_v12 = vld [vmem:[%s5569_s1 + $0xa8] ss:$16 sps:$4 sm:$0xff]  }
   0x5   :  { %v3710_v13 = vld [vmem:[%s5569_s1 + $0x84] ss:$16 sps:$4 sm:$0xff]   ;;  %v3712_v14 = vld [vmem:[%s5569_s1 + $0x8c] ss:$16 sps:$4 sm:$0xff]   ;;  %v3714_v15 = vld [vmem:[%s5569_s1 + $0x80] ss:$16 sps:$4 sm:$0xff]  }
   0x6   :  { %v3715_v16 = vld [vmem:[%s5569_s1 + $0x88] ss:$16 sps:$4 sm:$0xff]   ;;  %v3716_v17 = vld [vmem:[%s5569_s1 + $0x64] ss:$16 sps:$4 sm:$0xff]   ;;  %v3718_v18 = vld [vmem:[%s5569_s1 + $0x6c] ss:$16 sps:$4 sm:$0xff]  }
   0x7   :  { %224 = vmatpush1.bf16.msra.mxu0 %v3702_v7  ;;  %265 = vmatpush1.bf16.msra.mxu1 %v3703_v8  ;;  %v3720_v19 = vld [vmem:[%s5569_s1 + $0x60] ss:$16 sps:$4 sm:$0xff]   ;;  %v3721_v20 = vld [vmem:[%s5569_s1 + $0x68] ss:$16 sps:$4 sm:$0xff]   ;;  %v3722_v21 = vld [vmem:[%s5569_s1 + $0x44] ss:$16 sps:$4 sm:$0xff]  }
   0x8   :  { %225 = vmatprep.subr.bf16.mxu0 %v3704_v9  ;;  %266 = vmatprep.subr.bf16.mxu1 %v3706_v10  ;;  %v3724_v22 = vld [vmem:[%s5569_s1 + $0x4c] ss:$16 sps:$4 sm:$0xff]   ;;  %v3726_v23 = vld [vmem:[%s5569_s1 + $0x40] ss:$16 sps:$4 sm:$0xff]   ;;  %v3727_v24 = vld [vmem:[%s5569_s1 + $0x48] ss:$16 sps:$4 sm:$0xff]  }
   0x9   :  { %v3728_v25 = vld [vmem:[%s5569_s1 + $0x24] ss:$16 sps:$4 sm:$0xff]   ;;  %v3730_v26 = vld [vmem:[%s5569_s1 + $0x2c] ss:$16 sps:$4 sm:$0xff]   ;;  %v3732_v27 = vld [vmem:[%s5569_s1 + $0x20] ss:$16 sps:$4 sm:$0xff]  }
   0xa   :  { %v3733_v28 = vld [vmem:[%s5569_s1 + $0x28] ss:$16 sps:$4 sm:$0xff]   ;;  %v3734_v29 = vld [vmem:[%s5569_s1 + $0x4] ss:$16 sps:$4 sm:$0xff]   ;;  %v3736_v30 = vld [vmem:[%s5569_s1 + $0xc] ss:$16 sps:$4 sm:$0xff]  }
   0xb   :  { %226 = vmatpush1.bf16.msra.mxu0 %v3708_v11  ;;  %267 = vmatpush1.bf16.msra.mxu1 %v3709_v12  ;;  %v3738_v31 = vld [vmem:[%s5569_s1] ss:$16 sps:$4 sm:$0xff]   ;;  %v3739_v32 = vld [vmem:[%s5569_s1 + $0x8] ss:$16 sps:$4 sm:$0xff]   ;;  %v3742_v33 = vld [vmem:[%s5571_s3 + $0xe4] ss:$16 sps:$4 sm:$0xff]  }
   0xc   :  { %227 = vmatprep.subr.bf16.mxu0 %v3710_v13  ;;  %268 = vmatprep.subr.bf16.mxu1 %v3712_v14  ;;  %v3745_v34 = vld [vmem:[%s5571_s3 + $0x2e4] ss:$16 sps:$4 sm:$0xff]   ;;  %v28_v35 = vld [vmem:[%s5568_s0] sm:$0xf] }
   0xd   :  { %v3740_v36 = vld [vmem:[%s5571_s3 + $0xe0] ss:$16 sps:$4 sm:$0xff]   ;;  %v3748_v38 = vld [vmem:[%s5571_s3 + $0xc4] ss:$16 sps:$4 sm:$0xff]  }
   0xe   :  { %v3743_v37 = vld [vmem:[%s5571_s3 + $0x2e0] ss:$16 sps:$4 sm:$0xff]   ;;  %v3751_v39 = vld [vmem:[%s5571_s3 + $0x2c4] ss:$16 sps:$4 sm:$0xff]  }
   0xf   :  { %228 = vmatpush1.bf16.msra.mxu0 %v3714_v15  ;;  %269 = vmatpush1.bf16.msra.mxu1 %v3715_v16  ;;  %v3746_v40 = vld [vmem:[%s5571_s3 + $0xc0] ss:$16 sps:$4 sm:$0xff]   ;;  %v3754_v42 = vld [vmem:[%s5571_s3 + $0xa4] ss:$16 sps:$4 sm:$0xff]  }
  0x10   :  { %229 = vmatprep.subr.bf16.mxu0 %v3716_v17  ;;  %270 = vmatprep.subr.bf16.mxu1 %v3718_v18  ;;  %v3749_v41 = vld [vmem:[%s5571_s3 + $0x2c0] ss:$16 sps:$4 sm:$0xff]   ;;  %v3757_v43 = vld [vmem:[%s5571_s3 + $0x2a4] ss:$16 sps:$4 sm:$0xff]  }
  0x11   :  { %v3752_v44 = vld [vmem:[%s5571_s3 + $0xa0] ss:$16 sps:$4 sm:$0xff]   ;;  %v3760_v46 = vld [vmem:[%s5571_s3 + $0x84] ss:$16 sps:$4 sm:$0xff]  }
  0x12   :  { %v3755_v45 = vld [vmem:[%s5571_s3 + $0x2a0] ss:$16 sps:$4 sm:$0xff]   ;;  %v3763_v47 = vld [vmem:[%s5571_s3 + $0x284] ss:$16 sps:$4 sm:$0xff]  }
  0x13   :  { %230 = vmatpush1.bf16.msra.mxu0 %v3720_v19  ;;  %271 = vmatpush1.bf16.msra.mxu1 %v3721_v20  ;;  %v3758_v48 = vld [vmem:[%s5571_s3 + $0x80] ss:$16 sps:$4 sm:$0xff]   ;;  %v3766_v50 = vld [vmem:[%s5571_s3 + $0x64] ss:$16 sps:$4 sm:$0xff]  }
  0x14   :  { %231 = vmatprep.subr.bf16.mxu0 %v3722_v21  ;;  %272 = vmatprep.subr.bf16.mxu1 %v3724_v22  ;;  %v3761_v49 = vld [vmem:[%s5571_s3 + $0x280] ss:$16 sps:$4 sm:$0xff]   ;;  %v3769_v51 = vld [vmem:[%s5571_s3 + $0x264] ss:$16 sps:$4 sm:$0xff]  }
  0x15   :  { %v3764_v52 = vld [vmem:[%s5571_s3 + $0x60] ss:$16 sps:$4 sm:$0xff]   ;;  %v3772_v54 = vld [vmem:[%s5571_s3 + $0x44] ss:$16 sps:$4 sm:$0xff]  }
  0x16   :  { %v3767_v53 = vld [vmem:[%s5571_s3 + $0x260] ss:$16 sps:$4 sm:$0xff]   ;;  %v3775_v55 = vld [vmem:[%s5571_s3 + $0x244] ss:$16 sps:$4 sm:$0xff]  }
  0x17   :  { %232 = vmatpush1.bf16.msra.mxu0 %v3726_v23  ;;  %273 = vmatpush1.bf16.msra.mxu1 %v3727_v24  ;;  %v3770_v56 = vld [vmem:[%s5571_s3 + $0x40] ss:$16 sps:$4 sm:$0xff]   ;;  %v3778_v58 = vld [vmem:[%s5571_s3 + $0x24] ss:$16 sps:$4 sm:$0xff]  }
  0x18   :  { %233 = vmatprep.subr.bf16.mxu0 %v3728_v25  ;;  %274 = vmatprep.subr.bf16.mxu1 %v3730_v26  ;;  %v3773_v57 = vld [vmem:[%s5571_s3 + $0x240] ss:$16 sps:$4 sm:$0xff]   ;;  %v3781_v59 = vld [vmem:[%s5571_s3 + $0x224] ss:$16 sps:$4 sm:$0xff]  }
  0x19   :  { %v3776_v60 = vld [vmem:[%s5571_s3 + $0x20] ss:$16 sps:$4 sm:$0xff]   ;;  %v3784_v62 = vld [vmem:[%s5571_s3 + $0x4] ss:$16 sps:$4 sm:$0xff]  }
  0x1a   :  { %v3779_v61 = vld [vmem:[%s5571_s3 + $0x220] ss:$16 sps:$4 sm:$0xff]   ;;  %v3787_v63 = vld [vmem:[%s5571_s3 + $0x204] ss:$16 sps:$4 sm:$0xff]  }
  0x1b   :  { %234 = vmatpush1.bf16.msra.mxu0 %v3732_v27  ;;  %275 = vmatpush1.bf16.msra.mxu1 %v3733_v28  ;;  %v3782_v0 = vld [vmem:[%s5571_s3] ss:$16 sps:$4 sm:$0xff]   ;;  %v3790_v3 = vld [vmem:[%s5571_s3 + $0x1e4] ss:$16 sps:$4 sm:$0xff]  }
  0x1c   :  { %235 = vmatprep.subr.bf16.mxu0 %v3734_v29  ;;  %276 = vmatprep.subr.bf16.mxu1 %v3736_v30  ;;  %v3785_v1 = vld [vmem:[%s5571_s3 + $0x200] ss:$16 sps:$4 sm:$0xff]   ;;  %v3793_v4 = vld [vmem:[%s5571_s3 + $0x3e4] ss:$16 sps:$4 sm:$0xff]  }
  0x1d   :  { %v3788_v5 = vld [vmem:[%s5571_s3 + $0x1e0] ss:$16 sps:$4 sm:$0xff]   ;;  %v3796_v7 = vld [vmem:[%s5571_s3 + $0x1c4] ss:$16 sps:$4 sm:$0xff]  }
  0x1e   :  { %v3791_v6 = vld [vmem:[%s5571_s3 + $0x3e0] ss:$16 sps:$4 sm:$0xff]   ;;  %v3799_v8 = vld [vmem:[%s5571_s3 + $0x3c4] ss:$16 sps:$4 sm:$0xff]  }
  0x1f   :  { %236 = vmatpush1.bf16.msra.mxu0 %v3738_v31  ;;  %277 = vmatpush1.bf16.msra.mxu1 %v3739_v32  ;;  %v3794_v9 = vld [vmem:[%s5571_s3 + $0x1c0] ss:$16 sps:$4 sm:$0xff]   ;;  %v3802_v11 = vld [vmem:[%s5571_s3 + $0x1a4] ss:$16 sps:$4 sm:$0xff]  }
  0x20   :  { %1137 = vmatprep.subr.bf16.mxu0 %v3742_v33  ;;  %1178 = vmatprep.subr.bf16.mxu1 %v3745_v34  ;;  %v3797_v10 = vld [vmem:[%s5571_s3 + $0x3c0] ss:$16 sps:$4 sm:$0xff]   ;;  %v3805_v12 = vld [vmem:[%s5571_s3 + $0x3a4] ss:$16 sps:$4 sm:$0xff]  }
  0x21   :  { %v3800_v13 = vld [vmem:[%s5571_s3 + $0x1a0] ss:$16 sps:$4 sm:$0xff]   ;;  %v3808_v15 = vld [vmem:[%s5571_s3 + $0x184] ss:$16 sps:$4 sm:$0xff]  }
  0x22   :  { %254 = vmatmul.mubr.bf16.vlgmr.msra.gmra.mxu0 %v28_v35  ;;  %295 = vmatmul.mubr.bf16.vlgmr.msra.gmra.mxu1 %v28_v35  ;;  %v3803_v14 = vld [vmem:[%s5571_s3 + $0x3a0] ss:$16 sps:$4 sm:$0xff]   ;;  %v3811_v16 = vld [vmem:[%s5571_s3 + $0x384] ss:$16 sps:$4 sm:$0xff]   ;;  %v3838_v35 = vld [vmem:[%s5571_s3 + $0xec] ss:$16 sps:$4 sm:$0xff]  }
  0x23   :  { %1138 = vmatpush1.bf16.msra.mxu0 %v3740_v36  ;;  %1179 = vmatpush1.bf16.msra.mxu1 %v3743_v37  ;;  %v3806_v17 = vld [vmem:[%s5571_s3 + $0x180] ss:$16 sps:$4 sm:$0xff]   ;;  %v3814_v19 = vld [vmem:[%s5571_s3 + $0x164] ss:$16 sps:$4 sm:$0xff]   ;;  %v3841_v36 = vld [vmem:[%s5571_s3 + $0x2ec] ss:$16 sps:$4 sm:$0xff]  }
  0x24   :  { %1139 = vmatprep.subr.bf16.mxu0 %v3748_v38  ;;  %1180 = vmatprep.subr.bf16.mxu1 %v3751_v39  ;;  %v3809_v18 = vld [vmem:[%s5571_s3 + $0x380] ss:$16 sps:$4 sm:$0xff]   ;;  %v3817_v20 = vld [vmem:[%s5571_s3 + $0x364] ss:$16 sps:$4 sm:$0xff]  }
  0x25   :  { %v3812_v21 = vld [vmem:[%s5571_s3 + $0x160] ss:$16 sps:$4 sm:$0xff]   ;;  %v3820_v23 = vld [vmem:[%s5571_s3 + $0x144] ss:$16 sps:$4 sm:$0xff]  }
  0x26   :  { %v3815_v22 = vld [vmem:[%s5571_s3 + $0x360] ss:$16 sps:$4 sm:$0xff]   ;;  %v3823_v24 = vld [vmem:[%s5571_s3 + $0x344] ss:$16 sps:$4 sm:$0xff]  }
  0x27   :  { %1140 = vmatpush1.bf16.msra.mxu0 %v3746_v40  ;;  %1181 = vmatpush1.bf16.msra.mxu1 %v3749_v41  ;;  %v3818_v25 = vld [vmem:[%s5571_s3 + $0x140] ss:$16 sps:$4 sm:$0xff]   ;;  %v3826_v27 = vld [vmem:[%s5571_s3 + $0x124] ss:$16 sps:$4 sm:$0xff]  }
  0x28   :  { %1141 = vmatprep.subr.bf16.mxu0 %v3754_v42  ;;  %1182 = vmatprep.subr.bf16.mxu1 %v3757_v43  ;;  %v3821_v26 = vld [vmem:[%s5571_s3 + $0x340] ss:$16 sps:$4 sm:$0xff]   ;;  %v3829_v28 = vld [vmem:[%s5571_s3 + $0x324] ss:$16 sps:$4 sm:$0xff]  }
  0x29   :  { %v3824_v29 = vld [vmem:[%s5571_s3 + $0x120] ss:$16 sps:$4 sm:$0xff]   ;;  %v3832_v31 = vld [vmem:[%s5571_s3 + $0x104] ss:$16 sps:$4 sm:$0xff]  }
  0x2a   :  { %v3827_v30 = vld [vmem:[%s5571_s3 + $0x320] ss:$16 sps:$4 sm:$0xff]   ;;  %v3835_v32 = vld [vmem:[%s5571_s3 + $0x304] ss:$16 sps:$4 sm:$0xff]  }
  0x2b   :  { %1142 = vmatpush1.bf16.msra.mxu0 %v3752_v44  ;;  %1183 = vmatpush1.bf16.msra.mxu1 %v3755_v45  ;;  %v3830_v33 = vld [vmem:[%s5571_s3 + $0x100] ss:$16 sps:$4 sm:$0xff]  }
  0x2c   :  { %1143 = vmatprep.subr.bf16.mxu0 %v3760_v46  ;;  %1184 = vmatprep.subr.bf16.mxu1 %v3763_v47  ;;  %v3833_v34 = vld [vmem:[%s5571_s3 + $0x300] ss:$16 sps:$4 sm:$0xff]  }
  0x2f   :  { %1144 = vmatpush1.bf16.msra.mxu0 %v3758_v48  ;;  %1185 = vmatpush1.bf16.msra.mxu1 %v3761_v49 }
  0x30   :  { %1145 = vmatprep.subr.bf16.mxu0 %v3766_v50  ;;  %1186 = vmatprep.subr.bf16.mxu1 %v3769_v51 }
  0x33   :  { %1146 = vmatpush1.bf16.msra.mxu0 %v3764_v52  ;;  %1187 = vmatpush1.bf16.msra.mxu1 %v3767_v53 }
  0x34   :  { %1147 = vmatprep.subr.bf16.mxu0 %v3772_v54  ;;  %1188 = vmatprep.subr.bf16.mxu1 %v3775_v55 }
  0x37   :  { %1148 = vmatpush1.bf16.msra.mxu0 %v3770_v56  ;;  %1189 = vmatpush1.bf16.msra.mxu1 %v3773_v57 }
  0x38   :  { %1149 = vmatprep.subr.bf16.mxu0 %v3778_v58  ;;  %1190 = vmatprep.subr.bf16.mxu1 %v3781_v59 }
  0x3b   :  { %1150 = vmatpush1.bf16.msra.mxu0 %v3776_v60  ;;  %1191 = vmatpush1.bf16.msra.mxu1 %v3779_v61 }
  0x3c   :  { %1151 = vmatprep.subr.bf16.mxu0 %v3784_v62  ;;  %1192 = vmatprep.subr.bf16.mxu1 %v3787_v63 }
  0x3f   :  { %1152 = vmatpush1.bf16.msra.mxu0 %v3782_v0  ;;  %1193 = vmatpush1.bf16.msra.mxu1 %v3785_v1 }
  0x40   :  { %1153 = vmatprep.subr.bf16.mxu0 %v3790_v3  ;;  %1194 = vmatprep.subr.bf16.mxu1 %v3793_v4 }
  0x43   :  { %1154 = vmatpush2.bf16.msra.mxu0 %v3788_v5  ;;  %1195 = vmatpush2.bf16.msra.mxu1 %v3791_v6 }
  0x44   :  { %1155 = vmatprep.subr.bf16.mxu0 %v3796_v7  ;;  %1196 = vmatprep.subr.bf16.mxu1 %v3799_v8 }
  0x47   :  { %1156 = vmatpush2.bf16.msra.mxu0 %v3794_v9  ;;  %1197 = vmatpush2.bf16.msra.mxu1 %v3797_v10 }
  0x48   :  { %1157 = vmatprep.subr.bf16.mxu0 %v3802_v11  ;;  %1198 = vmatprep.subr.bf16.mxu1 %v3805_v12 }
  0x4b   :  { %1158 = vmatpush2.bf16.msra.mxu0 %v3800_v13  ;;  %1199 = vmatpush2.bf16.msra.mxu1 %v3803_v14 }
  0x4c   :  { %1159 = vmatprep.subr.bf16.mxu0 %v3808_v15  ;;  %1200 = vmatprep.subr.bf16.mxu1 %v3811_v16 }
  0x4f   :  { %1160 = vmatpush2.bf16.msra.mxu0 %v3806_v17  ;;  %1201 = vmatpush2.bf16.msra.mxu1 %v3809_v18 }
  0x50   :  { %1161 = vmatprep.subr.bf16.mxu0 %v3814_v19  ;;  %1202 = vmatprep.subr.bf16.mxu1 %v3817_v20 }
  0x53   :  { %1162 = vmatpush2.bf16.msra.mxu0 %v3812_v21  ;;  %1203 = vmatpush2.bf16.msra.mxu1 %v3815_v22 }
  0x54   :  { %1163 = vmatprep.subr.bf16.mxu0 %v3820_v23  ;;  %1204 = vmatprep.subr.bf16.mxu1 %v3823_v24 }
  0x57   :  { %1164 = vmatpush2.bf16.msra.mxu0 %v3818_v25  ;;  %1205 = vmatpush2.bf16.msra.mxu1 %v3821_v26 }
  0x58   :  { %1165 = vmatprep.subr.bf16.mxu0 %v3826_v27  ;;  %1206 = vmatprep.subr.bf16.mxu1 %v3829_v28 }
  0x5b   :  { %1166 = vmatpush2.bf16.msra.mxu0 %v3824_v29  ;;  %1207 = vmatpush2.bf16.msra.mxu1 %v3827_v30 }
  0x5c   :  { %1167 = vmatprep.subr.bf16.mxu0 %v3832_v31  ;;  %1208 = vmatprep.subr.bf16.mxu1 %v3835_v32 }
  0x5f   :  { %1168 = vmatpush2.bf16.msra.mxu0 %v3830_v33  ;;  %1209 = vmatpush2.bf16.msra.mxu1 %v3833_v34 }
  0x60   :  { %1219 = vmatprep.subr.bf16.mxu0 %v3838_v35  ;;  %1260 = vmatprep.subr.bf16.mxu1 %v3841_v36 }
  0x61   :  { %12 = vsyncpa [#allocation3], 0  ;;  %v4276_v37 = vmov 1966171168   ;;  %v320_v39 = vlaneseq  ;;  %v3836_v13 = vld [vmem:[%s5571_s3 + $0xe8] ss:$16 sps:$4 sm:$0xff]  }
  0x62   :  { %v318_v38 = vunpack.c.l.s4 %v4276_v37  ;;  %v3287_v42 = vld.sshfl [vmem:[%s5570_s2] sm:$0x33 pattern:$0x75316420]  ;;  %v3839_v14 = vld [vmem:[%s5571_s3 + $0x2e8] ss:$16 sps:$4 sm:$0xff]  }
  0x63   :  { %v321_v41 = vshrl.u32 %v320_v39, 7  ;;  %v316_v44 = vcombine.high %v3287_v42, %v3287_v42  ;;  %v3844_v17 = vld [vmem:[%s5571_s3 + $0xcc] ss:$16 sps:$4 sm:$0xff]   ;;  %v3842_v19 = vld [vmem:[%s5571_s3 + $0xc8] ss:$16 sps:$4 sm:$0xff]   ;;  %vm3239_vm0 = vcmask 125952  }
  0x64   :  { %v319_v40 = vunpack.c.0.s8 %v318_v38  ;;  %v3847_v18 = vld [vmem:[%s5571_s3 + $0x2cc] ss:$16 sps:$4 sm:$0xff]   ;;  %v3845_v20 = vld [vmem:[%s5571_s3 + $0x2c8] ss:$16 sps:$4 sm:$0xff]  }
  0x65   :  { %v4624_v50 = vsub.s32 0, %v321_v41  ;;  %v3850_v21 = vld [vmem:[%s5571_s3 + $0xac] ss:$16 sps:$4 sm:$0xff]   ;;  %v3848_v23 = vld [vmem:[%s5571_s3 + $0xa8] ss:$16 sps:$4 sm:$0xff]  }
  0x66   :  { %v4620_v43 = vsub.s32 %v319_v40, %v321_v41  ;;  %v3853_v22 = vld [vmem:[%s5571_s3 + $0x2ac] ss:$16 sps:$4 sm:$0xff]   ;;  %v3851_v24 = vld [vmem:[%s5571_s3 + $0x2a8] ss:$16 sps:$4 sm:$0xff]  }
  0x67   :  { %v3856_v25 = vld [vmem:[%s5571_s3 + $0x8c] ss:$16 sps:$4 sm:$0xff]   ;;  %v3854_v27 = vld [vmem:[%s5571_s3 + $0x88] ss:$16 sps:$4 sm:$0xff]  }
  0x68   :  { %v323_v45 = vrot.slane %v3287_v42, %v4620_v43  ;;  %v330_v46 = vrot.slane %v316_v44, %v4620_v43  ;;  %v3859_v26 = vld [vmem:[%s5571_s3 + $0x28c] ss:$16 sps:$4 sm:$0xff]   ;;  %v3857_v28 = vld [vmem:[%s5571_s3 + $0x288] ss:$16 sps:$4 sm:$0xff]  }
  0x69   :  { %v3862_v29 = vld [vmem:[%s5571_s3 + $0x6c] ss:$16 sps:$4 sm:$0xff]   ;;  %v3860_v31 = vld [vmem:[%s5571_s3 + $0x68] ss:$16 sps:$4 sm:$0xff]  }
  0x6a   :  { %v331_v47 = vcombine.high %v323_v45, %v323_v45  ;;  %v332_v48 = vcombine.high %v330_v46, %v330_v46  ;;  %v334_v49 = vpack.i.b16 %v323_v45, %v323_v45  ;;  %v341_v52 = vpack.i.b16 %v330_v46, %v330_v46  ;;  %v3865_v30 = vld [vmem:[%s5571_s3 + $0x26c] ss:$16 sps:$4 sm:$0xff]   ;;  %v3863_v32 = vld [vmem:[%s5571_s3 + $0x268] ss:$16 sps:$4 sm:$0xff]  }
  0x6b   :  { %v3868_v33 = vld [vmem:[%s5571_s3 + $0x4c] ss:$16 sps:$4 sm:$0xff]   ;;  %v3866_v35 = vld [vmem:[%s5571_s3 + $0x48] ss:$16 sps:$4 sm:$0xff]  }
  0x6c   :  { %v348_v51 = vpack.i.b16 %v331_v47, %v331_v47  ;;  %v355_v53 = vpack.i.b16 %v332_v48, %v332_v48  ;;  %v339_v55 = vrot.slane %v334_v49, %v4624_v50  ;;  %v346_v60 = vrot.slane %v341_v52, %v4624_v50  ;;  %v3871_v34 = vld [vmem:[%s5571_s3 + $0x24c] ss:$16 sps:$4 sm:$0xff]   ;;  %v3869_v36 = vld [vmem:[%s5571_s3 + $0x248] ss:$16 sps:$4 sm:$0xff]  }
  0x6d   :  { %v3874_v37 = vld [vmem:[%s5571_s3 + $0x2c] ss:$16 sps:$4 sm:$0xff]   ;;  %v3872_v39 = vld [vmem:[%s5571_s3 + $0x28] ss:$16 sps:$4 sm:$0xff]  }
  0x6e   :  { %v353_v57 = vrot.slane %v348_v51, %v4624_v50  ;;  %v360_v61 = vrot.slane %v355_v53, %v4624_v50  ;;  %v3877_v38 = vld [vmem:[%s5571_s3 + $0x22c] ss:$16 sps:$4 sm:$0xff]   ;;  %v3875_v40 = vld [vmem:[%s5571_s3 + $0x228] ss:$16 sps:$4 sm:$0xff]  }
  0x6f   :  { %v3880_v41 = vld [vmem:[%s5571_s3 + $0xc] ss:$16 sps:$4 sm:$0xff]   ;;  %v3878_v44 = vld [vmem:[%s5571_s3 + $0x8] ss:$16 sps:$4 sm:$0xff]  }
  0x70   :  { %v3883_v42 = vld [vmem:[%s5571_s3 + $0x20c] ss:$16 sps:$4 sm:$0xff]   ;;  %v3881_v45 = vld [vmem:[%s5571_s3 + $0x208] ss:$16 sps:$4 sm:$0xff]  }
  0x71   :  { %v3886_v46 = vld [vmem:[%s5571_s3 + $0x1ec] ss:$16 sps:$4 sm:$0xff]   ;;  %v3884_v48 = vld [vmem:[%s5571_s3 + $0x1e8] ss:$16 sps:$4 sm:$0xff]  }
  0x72   :  { %v3889_v47 = vld [vmem:[%s5571_s3 + $0x3ec] ss:$16 sps:$4 sm:$0xff]   ;;  %v3887_v49 = vld [vmem:[%s5571_s3 + $0x3e8] ss:$16 sps:$4 sm:$0xff]  }
  0x73   :  { %v3892_v51 = vld [vmem:[%s5571_s3 + $0x1cc] ss:$16 sps:$4 sm:$0xff]   ;;  %v3890_v53 = vld [vmem:[%s5571_s3 + $0x1c8] ss:$16 sps:$4 sm:$0xff]  }
  0x74   :  { %v3895_v52 = vld [vmem:[%s5571_s3 + $0x3cc] ss:$16 sps:$4 sm:$0xff]  }
  0xe2   :  { %v255_v54 = vpop.f32.mrf.mxu0  ;;  %v296_v56 = vpop.f32.mrf.mxu1 }
  0xe3   :  { %v303_v58 = vpack.c.bf16 %v255_v54, %v255_v54  ;;  %v305_v59 = vpack.c.bf16 %v296_v56, %v296_v56  ;;  %v3893_v54 = vld [vmem:[%s5571_s3 + $0x3c8] ss:$16 sps:$4 sm:$0xff]   ;;  %v3901_v56 = vld [vmem:[%s5571_s3 + $0x3ac] ss:$16 sps:$4 sm:$0xff]  }
  0xe4   :  { %v257_v62 = vpop.f32.mrf.mxu0  ;;  %v298_v63 = vpop.f32.mrf.mxu1 }
  0xe5   :  { %v304_v0 = vpack.c.bf16 %v257_v62, %v257_v62  ;;  %v306_v1 = vpack.c.bf16 %v298_v63, %v298_v63  ;;  %v361_v3 = vadd.bf16 %v339_v55, %v303_v58  ;;  %v363_v4 = vadd.bf16 %v353_v57, %v305_v59  ;;  %v3898_v55 = vld [vmem:[%s5571_s3 + $0x1ac] ss:$16 sps:$4 sm:$0xff]   ;;  %v3896_v57 = vld [vmem:[%s5571_s3 + $0x1a8] ss:$16 sps:$4 sm:$0xff]  }
  0xe6   :  { %v259_v5 = vpop.f32.mrf.mxu0  ;;  %v300_v6 = vpop.f32.mrf.mxu1  ;;  %v3899_v58 = vld [vmem:[%s5571_s3 + $0x3a8] ss:$16 sps:$4 sm:$0xff]   ;;  %v3904_v59 = vld [vmem:[%s5571_s3 + $0x18c] ss:$16 sps:$4 sm:$0xff]  }
  0xe7   :  { %v362_v7 = vadd.bf16 %v346_v60, %v304_v0  ;;  %v364_v8 = vadd.bf16 %v360_v61, %v306_v1  ;;  %v4639_v15 = vmax.bf16 %v4275_v2, %v361_v3  ;;  %v4642_v16 = vmax.bf16 %v4275_v2, %v363_v4  ;;  %v3907_v60 = vld [vmem:[%s5571_s3 + $0x38c] ss:$16 sps:$4 sm:$0xff]   ;;  %v3902_v61 = vld [vmem:[%s5571_s3 + $0x188] ss:$16 sps:$4 sm:$0xff]  }
  0xe8   :  { %v260_v9 = vpop.f32.mrf.mxu0  ;;  %v301_v10 = vpop.f32.mrf.mxu1  ;;  %v3905_v62 = vld [vmem:[%s5571_s3 + $0x388] ss:$16 sps:$4 sm:$0xff]   ;;  %v3910_v63 = vld [vmem:[%s5571_s3 + $0x16c] ss:$16 sps:$4 sm:$0xff]  }
  0xe9   :  { %v366_v11 = vmax.bf16 %v4275_v2, %v362_v7  ;;  %v368_v12 = vmax.bf16 %v4275_v2, %v364_v8  ;;  %v3913_v0 = vld [vmem:[%s5571_s3 + $0x36c] ss:$16 sps:$4 sm:$0xff]   ;;  %v3908_v1 = vld [vmem:[%s5571_s3 + $0x168] ss:$16 sps:$4 sm:$0xff]  }
  0xea   :  { %v3911_v3 = vld [vmem:[%s5571_s3 + $0x368] ss:$16 sps:$4 sm:$0xff]   ;;  %v3916_v4 = vld [vmem:[%s5571_s3 + $0x14c] ss:$16 sps:$4 sm:$0xff]  }
  0xeb   :  { %1169 = vmatprep.mubr.bf16.mxu0 %v366_v11  ;;  %1210 = vmatprep.mubr.bf16.mxu1 %v368_v12  ;;  %v3919_v5 = vld [vmem:[%s5571_s3 + $0x34c] ss:$16 sps:$4 sm:$0xff]   ;;  %v3914_v6 = vld [vmem:[%s5571_s3 + $0x148] ss:$16 sps:$4 sm:$0xff]  }
  0xec   :  { %1170 = vmatmul.mubr.bf16.vlgmr.msra.gmra.mxu0 %v4639_v15  ;;  %1211 = vmatmul.mubr.bf16.vlgmr.msra.gmra.mxu1 %v4642_v16  ;;  %v3917_v7 = vld [vmem:[%s5571_s3 + $0x348] ss:$16 sps:$4 sm:$0xff]   ;;  %v3922_v8 = vld [vmem:[%s5571_s3 + $0x12c] ss:$16 sps:$4 sm:$0xff]  }
  0xed   :  { %1220 = vmatpush1.bf16.msra.mxu0 %v3836_v13  ;;  %1261 = vmatpush1.bf16.msra.mxu1 %v3839_v14  ;;  %v3925_v9 = vld [vmem:[%s5571_s3 + $0x32c] ss:$16 sps:$4 sm:$0xff]   ;;  %v3920_v10 = vld [vmem:[%s5571_s3 + $0x128] ss:$16 sps:$4 sm:$0xff]  }
  0xee   :  { %1251 = vmatprep.mubr.bf16.mxu0 %v366_v11  ;;  %1292 = vmatprep.mubr.bf16.mxu1 %v368_v12  ;;  %v3923_v11 = vld [vmem:[%s5571_s3 + $0x328] ss:$16 sps:$4 sm:$0xff]   ;;  %v3928_v12 = vld [vmem:[%s5571_s3 + $0x10c] ss:$16 sps:$4 sm:$0xff]  }
  0xef   :  { %1221 = vmatprep.subr.bf16.mxu0 %v3844_v17  ;;  %1262 = vmatprep.subr.bf16.mxu1 %v3847_v18  ;;  %v3931_v13 = vld [vmem:[%s5571_s3 + $0x30c] ss:$16 sps:$4 sm:$0xff]   ;;  %v3926_v14 = vld [vmem:[%s5571_s3 + $0x108] ss:$16 sps:$4 sm:$0xff]  }
  0xf0   :  { %v3929_v17 = vld [vmem:[%s5571_s3 + $0x308] ss:$16 sps:$4 sm:$0xff]  }
  0xf1   :  { %1222 = vmatpush1.bf16.msra.mxu0 %v3842_v19  ;;  %1263 = vmatpush1.bf16.msra.mxu1 %v3845_v20  ;;  %v3934_v18 = vld [vmem:[%s5573_s5 + $0x18c] ss:$28 sps:$4 sm:$0xff]   ;;  %v3937_v20 = vld [vmem:[%s5573_s5 + $0x154] ss:$28 sps:$4 sm:$0xff]  }
  0xf2   :  { %1223 = vmatprep.subr.bf16.mxu0 %v3850_v21  ;;  %1264 = vmatprep.subr.bf16.mxu1 %v3853_v22  ;;  %v3932_v19 = vld [vmem:[%s5573_s5 + $0x188] ss:$28 sps:$4 sm:$0xff]   ;;  %v3935_v21 = vld [vmem:[%s5573_s5 + $0x150] ss:$28 sps:$4 sm:$0xff]   ;;  %v3940_v22 = vld [vmem:[%s5573_s5 + $0x11c] ss:$28 sps:$4 sm:$0xff]  }
  0xf5   :  { %1224 = vmatpush1.bf16.msra.mxu0 %v3848_v23  ;;  %1265 = vmatpush1.bf16.msra.mxu1 %v3851_v24  ;;  %v3938_v23 = vld [vmem:[%s5573_s5 + $0x118] ss:$28 sps:$4 sm:$0xff]   ;;  %v3980_v24 = vld [vmem:[%s5573_s5 + $0x508] ss:$28 sps:$4 sm:$0xff]  }
  0xf6   :  { %1225 = vmatprep.subr.bf16.mxu0 %v3856_v25  ;;  %1266 = vmatprep.subr.bf16.mxu1 %v3859_v26  ;;  %v3982_v25 = vld [vmem:[%s5573_s5 + $0x50c] ss:$28 sps:$4 sm:$0xff]  }
  0xf7   :  { %v3946_v26 = vld [vmem:[%s5573_s5 + $0xac] ss:$28 sps:$4 sm:$0xff]  }
  0xf9   :  { %1226 = vmatpush1.bf16.msra.mxu0 %v3854_v27  ;;  %1267 = vmatpush1.bf16.msra.mxu1 %v3857_v28  ;;  %v3944_v27 = vld [vmem:[%s5573_s5 + $0xa8] ss:$28 sps:$4 sm:$0xff]   ;;  %v3986_v28 = vld [vmem:[%s5573_s5 + $0x4d0] ss:$28 sps:$4 sm:$0xff]  }
  0xfa   :  { %1227 = vmatprep.subr.bf16.mxu0 %v3862_v29  ;;  %1268 = vmatprep.subr.bf16.mxu1 %v3865_v30  ;;  %v3988_v29 = vld [vmem:[%s5573_s5 + $0x4d4] ss:$28 sps:$4 sm:$0xff]  }
  0xfb   :  { %v3949_v30 = vld [vmem:[%s5573_s5 + $0x74] ss:$28 sps:$4 sm:$0xff]  }
  0xfd   :  { %1228 = vmatpush1.bf16.msra.mxu0 %v3860_v31  ;;  %1269 = vmatpush1.bf16.msra.mxu1 %v3863_v32  ;;  %v3947_v31 = vld [vmem:[%s5573_s5 + $0x70] ss:$28 sps:$4 sm:$0xff]   ;;  %v3992_v32 = vld [vmem:[%s5573_s5 + $0x498] ss:$28 sps:$4 sm:$0xff]  }
  0xfe   :  { %1229 = vmatprep.subr.bf16.mxu0 %v3868_v33  ;;  %1270 = vmatprep.subr.bf16.mxu1 %v3871_v34  ;;  %v3994_v33 = vld [vmem:[%s5573_s5 + $0x49c] ss:$28 sps:$4 sm:$0xff]  }
  0xff   :  { %v3952_v34 = vld [vmem:[%s5573_s5 + $0x3c] ss:$28 sps:$4 sm:$0xff]  }
 0x101   :  { %1230 = vmatpush1.bf16.msra.mxu0 %v3866_v35  ;;  %1271 = vmatpush1.bf16.msra.mxu1 %v3869_v36  ;;  %v3950_v35 = vld [vmem:[%s5573_s5 + $0x38] ss:$28 sps:$4 sm:$0xff]   ;;  %v3998_v36 = vld [vmem:[%s5573_s5 + $0x460] ss:$28 sps:$4 sm:$0xff]  }
 0x102   :  { %1231 = vmatprep.subr.bf16.mxu0 %v3874_v37  ;;  %1272 = vmatprep.subr.bf16.mxu1 %v3877_v38  ;;  %v4000_v37 = vld [vmem:[%s5573_s5 + $0x464] ss:$28 sps:$4 sm:$0xff]  }
 0x103   :  { %v3955_v38 = vld [vmem:[%s5573_s5 + $0x4] ss:$28 sps:$4 sm:$0xff]  }
 0x105   :  { %1232 = vmatpush1.bf16.msra.mxu0 %v3872_v39  ;;  %1273 = vmatpush1.bf16.msra.mxu1 %v3875_v40  ;;  %v3953_v39 = vld [vmem:[%s5573_s5] ss:$28 sps:$4 sm:$0xff]   ;;  %v4004_v40 = vld [vmem:[%s5573_s5 + $0x428] ss:$28 sps:$4 sm:$0xff]  }
 0x106   :  { %1233 = vmatprep.subr.bf16.mxu0 %v3880_v41  ;;  %1274 = vmatprep.subr.bf16.mxu1 %v3883_v42  ;;  %v4006_v41 = vld [vmem:[%s5573_s5 + $0x42c] ss:$28 sps:$4 sm:$0xff]  }
 0x107   :  { %v3958_v42 = vld [vmem:[%s5573_s5 + $0x34c] ss:$28 sps:$4 sm:$0xff]  }
 0x109   :  { %1234 = vmatpush1.bf16.msra.mxu0 %v3878_v44  ;;  %1275 = vmatpush1.bf16.msra.mxu1 %v3881_v45  ;;  %v3956_v44 = vld [vmem:[%s5573_s5 + $0x348] ss:$28 sps:$4 sm:$0xff]   ;;  %v4010_v45 = vld [vmem:[%s5573_s5 + $0x3f0] ss:$28 sps:$4 sm:$0xff]  }
 0x10a   :  { %1235 = vmatprep.subr.bf16.mxu0 %v3886_v46  ;;  %1276 = vmatprep.subr.bf16.mxu1 %v3889_v47  ;;  %v4012_v46 = vld [vmem:[%s5573_s5 + $0x3f4] ss:$28 sps:$4 sm:$0xff]  }
 0x10b   :  { %v3961_v47 = vld [vmem:[%s5573_s5 + $0x314] ss:$28 sps:$4 sm:$0xff]  }
 0x10d   :  { %1236 = vmatpush2.bf16.msra.mxu0 %v3884_v48  ;;  %1277 = vmatpush2.bf16.msra.mxu1 %v3887_v49  ;;  %v3959_v48 = vld [vmem:[%s5573_s5 + $0x310] ss:$28 sps:$4 sm:$0xff]   ;;  %v4016_v49 = vld [vmem:[%s5573_s5 + $0x3b8] ss:$28 sps:$4 sm:$0xff]  }
 0x10e   :  { %1237 = vmatprep.subr.bf16.mxu0 %v3892_v51  ;;  %1278 = vmatprep.subr.bf16.mxu1 %v3895_v52  ;;  %v4018_v51 = vld [vmem:[%s5573_s5 + $0x3bc] ss:$28 sps:$4 sm:$0xff]  }
 0x10f   :  { %v3964_v52 = vld [vmem:[%s5573_s5 + $0x2dc] ss:$28 sps:$4 sm:$0xff]  }
 0x111   :  { %1238 = vmatpush2.bf16.msra.mxu0 %v3890_v53  ;;  %1279 = vmatpush2.bf16.msra.mxu1 %v3893_v54  ;;  %v3962_v53 = vld [vmem:[%s5573_s5 + $0x2d8] ss:$28 sps:$4 sm:$0xff]   ;;  %v4022_v54 = vld [vmem:[%s5573_s5 + $0x380] ss:$28 sps:$4 sm:$0xff]  }
 0x112   :  { %1239 = vmatprep.subr.bf16.mxu0 %v3898_v55  ;;  %1280 = vmatprep.subr.bf16.mxu1 %v3901_v56  ;;  %v4024_v55 = vld [vmem:[%s5573_s5 + $0x384] ss:$28 sps:$4 sm:$0xff]  }
 0x113   :  { %v3967_v56 = vld [vmem:[%s5573_s5 + $0x2a4] ss:$28 sps:$4 sm:$0xff]  }
 0x115   :  { %1240 = vmatpush2.bf16.msra.mxu0 %v3896_v57  ;;  %1281 = vmatpush2.bf16.msra.mxu1 %v3899_v58  ;;  %v3965_v57 = vld [vmem:[%s5573_s5 + $0x2a0] ss:$28 sps:$4 sm:$0xff]   ;;  %v4028_v58 = vld [vmem:[%s5573_s5 + $0x6c8] ss:$28 sps:$4 sm:$0xff]  }
 0x116   :  { %1241 = vmatprep.subr.bf16.mxu0 %v3904_v59  ;;  %1282 = vmatprep.subr.bf16.mxu1 %v3907_v60  ;;  %v4030_v59 = vld [vmem:[%s5573_s5 + $0x6cc] ss:$28 sps:$4 sm:$0xff]  }
 0x117   :  { %v3970_v60 = vld [vmem:[%s5573_s5 + $0x26c] ss:$28 sps:$4 sm:$0xff]  }
 0x119   :  { %1242 = vmatpush2.bf16.msra.mxu0 %v3902_v61  ;;  %1283 = vmatpush2.bf16.msra.mxu1 %v3905_v62  ;;  %v3968_v61 = vld [vmem:[%s5573_s5 + $0x268] ss:$28 sps:$4 sm:$0xff]   ;;  %v4034_v62 = vld [vmem:[%s5573_s5 + $0x690] ss:$28 sps:$4 sm:$0xff]  }
 0x11a   :  { %1243 = vmatprep.subr.bf16.mxu0 %v3910_v63  ;;  %1284 = vmatprep.subr.bf16.mxu1 %v3913_v0  ;;  %v4036_v63 = vld [vmem:[%s5573_s5 + $0x694] ss:$28 sps:$4 sm:$0xff]  }
 0x11b   :  { %v3973_v0 = vld [vmem:[%s5573_s5 + $0x234] ss:$28 sps:$4 sm:$0xff]  }
 0x11d   :  { %1244 = vmatpush2.bf16.msra.mxu0 %v3908_v1  ;;  %1285 = vmatpush2.bf16.msra.mxu1 %v3911_v3  ;;  %v3971_v1 = vld [vmem:[%s5573_s5 + $0x230] ss:$28 sps:$4 sm:$0xff]   ;;  %v4040_v3 = vld [vmem:[%s5573_s5 + $0x658] ss:$28 sps:$4 sm:$0xff]  }
 0x11e   :  { %1245 = vmatprep.subr.bf16.mxu0 %v3916_v4  ;;  %1286 = vmatprep.subr.bf16.mxu1 %v3919_v5  ;;  %v4042_v4 = vld [vmem:[%s5573_s5 + $0x65c] ss:$28 sps:$4 sm:$0xff]  }
 0x11f   :  { %v3976_v5 = vld [vmem:[%s5573_s5 + $0x1fc] ss:$28 sps:$4 sm:$0xff]  }
 0x121   :  { %1246 = vmatpush2.bf16.msra.mxu0 %v3914_v6  ;;  %1287 = vmatpush2.bf16.msra.mxu1 %v3917_v7  ;;  %v3974_v6 = vld [vmem:[%s5573_s5 + $0x1f8] ss:$28 sps:$4 sm:$0xff]   ;;  %v4046_v7 = vld [vmem:[%s5573_s5 + $0x620] ss:$28 sps:$4 sm:$0xff]  }
 0x122   :  { %1247 = vmatprep.subr.bf16.mxu0 %v3922_v8  ;;  %1288 = vmatprep.subr.bf16.mxu1 %v3925_v9  ;;  %v4048_v8 = vld [vmem:[%s5573_s5 + $0x624] ss:$28 sps:$4 sm:$0xff]  }
 0x123   :  { %v3979_v9 = vld [vmem:[%s5573_s5 + $0x1c4] ss:$28 sps:$4 sm:$0xff]  }
 0x125   :  { %1248 = vmatpush2.bf16.msra.mxu0 %v3920_v10  ;;  %1289 = vmatpush2.bf16.msra.mxu1 %v3923_v11  ;;  %v3977_v10 = vld [vmem:[%s5573_s5 + $0x1c0] ss:$28 sps:$4 sm:$0xff]   ;;  %v4052_v11 = vld [vmem:[%s5573_s5 + $0x5e8] ss:$28 sps:$4 sm:$0xff]  }
 0x126   :  { %1249 = vmatprep.subr.bf16.mxu0 %v3928_v12  ;;  %1290 = vmatprep.subr.bf16.mxu1 %v3931_v13  ;;  %v4054_v12 = vld [vmem:[%s5573_s5 + $0x5ec] ss:$28 sps:$4 sm:$0xff]   ;;  %v3985_v13 = vld [vmem:[%s5573_s5 + $0x194] ss:$28 sps:$4 sm:$0xff]  }
 0x129   :  { %1250 = vmatpush2.bf16.msra.mxu0 %v3926_v14  ;;  %1291 = vmatpush2.bf16.msra.mxu1 %v3929_v17  ;;  %v4058_v14 = vld [vmem:[%s5573_s5 + $0x5b0] ss:$28 sps:$4 sm:$0xff]  }
 0x12a   :  { %2775 = vmatprep.subr.bf16.mxu0 %v3934_v18  ;;  %2816 = vmatprep.subr.bf16.mxu1 %v3982_v25  ;;  %v4060_v17 = vld [vmem:[%s5573_s5 + $0x5b4] ss:$28 sps:$4 sm:$0xff]   ;;  %v4066_v18 = vld [vmem:[%s5573_s5 + $0x57c] ss:$28 sps:$4 sm:$0xff]  }
 0x12c   :  { %1252 = vmatmul.mubr.bf16.vlgmr.msra.gmra.mxu0 %v4639_v15  ;;  %1293 = vmatmul.mubr.bf16.vlgmr.msra.gmra.mxu1 %v4642_v16  ;;  %v3943_v15 = vld [vmem:[%s5573_s5 + $0xe4] ss:$28 sps:$4 sm:$0xff]  }
 0x12d   :  { %2776 = vmatpush1.bf16.msra.mxu0 %v3932_v19  ;;  %v3941_v16 = vld [vmem:[%s5573_s5 + $0xe0] ss:$28 sps:$4 sm:$0xff]   ;;  %2817 = vmatpush1.bf16.msra.mxu1 %v3980_v24  ;;  %v4064_v19 = vld [vmem:[%s5573_s5 + $0x578] ss:$28 sps:$4 sm:$0xff]  }
 0x12e   :  { %2777 = vmatprep.subr.bf16.mxu0 %v3937_v20  ;;  %2818 = vmatprep.subr.bf16.mxu1 %v3988_v29  ;;  %v4072_v20 = vld [vmem:[%s5573_s5 + $0x544] ss:$28 sps:$4 sm:$0xff]  }
 0x131   :  { %2778 = vmatpush1.bf16.msra.mxu0 %v3935_v21  ;;  %2819 = vmatpush1.bf16.msra.mxu1 %v3986_v28  ;;  %v4070_v21 = vld [vmem:[%s5573_s5 + $0x540] ss:$28 sps:$4 sm:$0xff]  }
 0x132   :  { %2779 = vmatprep.subr.bf16.mxu0 %v3940_v22  ;;  %2820 = vmatprep.subr.bf16.mxu1 %v3994_v33  ;;  %v4078_v22 = vld [vmem:[%s5573_s5 + $0x514] ss:$28 sps:$4 sm:$0xff]  }
 0x135   :  { %2780 = vmatpush1.bf16.msra.mxu0 %v3938_v23  ;;  %2821 = vmatpush1.bf16.msra.mxu1 %v3992_v32  ;;  %v3416_v23 = vld.sshfl [vmem:[%s5572_s4] sm:$0x33 pattern:$0x75316420] }
 0x136   :  { %2781 = vmatprep.subr.bf16.mxu0 %v3943_v15  ;;  %2822 = vmatprep.subr.bf16.mxu1 %v4000_v37  ;;  %v1314_v15 = vcombine.high %v3416_v23, %v3416_v23 }
 0x138   :  { %v5033_v24 = vrot.slane %v1314_v15, %v4620_v43 }
 0x139   :  { %2782 = vmatpush1.bf16.msra.mxu0 %v3941_v16  ;;  %2823 = vmatpush1.bf16.msra.mxu1 %v3998_v36  ;;  %v5030_v16 = vrot.slane %v3416_v23, %v4620_v43 }
 0x13a   :  { %2783 = vmatprep.subr.bf16.mxu0 %v3946_v26  ;;  %2824 = vmatprep.subr.bf16.mxu1 %v4006_v41  ;;  %v1339_v26 = vpack.i.b16 %v5033_v24, %v5033_v24 }
 0x13b   :  { %v1332_v25 = vpack.i.b16 %v5030_v16, %v5030_v16 }
 0x13d   :  { %2784 = vmatpush1.bf16.msra.mxu0 %v3944_v27  ;;  %2825 = vmatpush1.bf16.msra.mxu1 %v4004_v40 }
 0x13e   :  { %2785 = vmatprep.subr.bf16.mxu0 %v3949_v30  ;;  %2826 = vmatprep.subr.bf16.mxu1 %v4012_v46  ;;  %v1337_v30 = vrot.slane %v1332_v25, %v4624_v50 }
 0x141   :  { %2786 = vmatpush1.bf16.msra.mxu0 %v3947_v31  ;;  %2827 = vmatpush1.bf16.msra.mxu1 %v4010_v45  ;;  %v3983_v45 = vld [vmem:[%s5573_s5 + $0x190] ss:$28 sps:$4 sm:$0xff]  }
 0x142   :  { %2787 = vmatprep.subr.bf16.mxu0 %v3952_v34  ;;  %2828 = vmatprep.subr.bf16.mxu1 %v4018_v51  ;;  %v3995_v51 = vld [vmem:[%s5573_s5 + $0x120] ss:$28 sps:$4 sm:$0xff]  }
 0x145   :  { %2788 = vmatpush1.bf16.msra.mxu0 %v3950_v35  ;;  %2829 = vmatpush1.bf16.msra.mxu1 %v4016_v49  ;;  %v1344_v35 = vrot.slane %v1339_v26, %v4624_v50  ;;  %v3997_v49 = vld [vmem:[%s5573_s5 + $0x124] ss:$28 sps:$4 sm:$0xff]  }
 0x146   :  { %2789 = vmatprep.subr.bf16.mxu0 %v3955_v38  ;;  %2830 = vmatprep.subr.bf16.mxu1 %v4024_v55  ;;  %v4007_v55 = vld [vmem:[%s5573_s5 + $0xb0] ss:$28 sps:$4 sm:$0xff]  }
 0x149   :  { %2790 = vmatpush1.bf16.msra.mxu0 %v3953_v39  ;;  %2831 = vmatpush1.bf16.msra.mxu1 %v4022_v54  ;;  %v4009_v54 = vld [vmem:[%s5573_s5 + $0xb4] ss:$28 sps:$4 sm:$0xff]  }
 0x14a   :  { %2791 = vmatprep.subr.bf16.mxu0 %v3958_v42  ;;  %2832 = vmatprep.subr.bf16.mxu1 %v4030_v59  ;;  %v4019_v59 = vld [vmem:[%s5573_s5 + $0x40] ss:$28 sps:$4 sm:$0xff]  }
 0x14d   :  { %2792 = vmatpush2.bf16.msra.mxu0 %v3956_v44  ;;  %2833 = vmatpush2.bf16.msra.mxu1 %v4028_v58  ;;  %v4021_v58 = vld [vmem:[%s5573_s5 + $0x44] ss:$28 sps:$4 sm:$0xff]  }
 0x14e   :  { %2793 = vmatprep.subr.bf16.mxu0 %v3961_v47  ;;  %2834 = vmatprep.subr.bf16.mxu1 %v4036_v63  ;;  %v3991_v47 = vld [vmem:[%s5573_s5 + $0x15c] ss:$28 sps:$4 sm:$0xff]   ;;  %v4031_v63 = vld [vmem:[%s5573_s5 + $0x350] ss:$28 sps:$4 sm:$0xff]  }
 0x151   :  { %2794 = vmatpush2.bf16.msra.mxu0 %v3959_v48  ;;  %2835 = vmatpush2.bf16.msra.mxu1 %v4034_v62  ;;  %v3989_v48 = vld [vmem:[%s5573_s5 + $0x158] ss:$28 sps:$4 sm:$0xff]  }
 0x152   :  { %2795 = vmatprep.subr.bf16.mxu0 %v3964_v52  ;;  %2836 = vmatprep.subr.bf16.mxu1 %v4042_v4  ;;  %v4003_v52 = vld [vmem:[%s5573_s5 + $0xec] ss:$28 sps:$4 sm:$0xff]   ;;  %v4033_v62 = vld [vmem:[%s5573_s5 + $0x354] ss:$28 sps:$4 sm:$0xff]   ;;  %v4043_v4 = vld [vmem:[%s5573_s5 + $0x2e0] ss:$28 sps:$4 sm:$0xff]  }
 0x155   :  { %2796 = vmatpush2.bf16.msra.mxu0 %v3962_v53  ;;  %2837 = vmatpush2.bf16.msra.mxu1 %v4040_v3  ;;  %v4001_v53 = vld [vmem:[%s5573_s5 + $0xe8] ss:$28 sps:$4 sm:$0xff]  }
 0x156   :  { %2797 = vmatprep.subr.bf16.mxu0 %v3967_v56  ;;  %2838 = vmatprep.subr.bf16.mxu1 %v4048_v8  ;;  %v4015_v56 = vld [vmem:[%s5573_s5 + $0x7c] ss:$28 sps:$4 sm:$0xff]   ;;  %v4045_v3 = vld [vmem:[%s5573_s5 + $0x2e4] ss:$28 sps:$4 sm:$0xff]   ;;  %v4055_v8 = vld [vmem:[%s5573_s5 + $0x270] ss:$28 sps:$4 sm:$0xff]  }
 0x159   :  { %2798 = vmatpush2.bf16.msra.mxu0 %v3965_v57  ;;  %2839 = vmatpush2.bf16.msra.mxu1 %v4046_v7  ;;  %v4013_v57 = vld [vmem:[%s5573_s5 + $0x78] ss:$28 sps:$4 sm:$0xff]  }
 0x15a   :  { %2799 = vmatprep.subr.bf16.mxu0 %v3970_v60  ;;  %2840 = vmatprep.subr.bf16.mxu1 %v4054_v12  ;;  %v4027_v60 = vld [vmem:[%s5573_s5 + $0xc] ss:$28 sps:$4 sm:$0xff]   ;;  %v4057_v7 = vld [vmem:[%s5573_s5 + $0x274] ss:$28 sps:$4 sm:$0xff]  }
 0x15b   :  { %v4061_v12 = vld [vmem:[%s5573_s5 + $0x238] ss:$28 sps:$4 sm:$0xff]  }
 0x15d   :  { %2800 = vmatpush2.bf16.msra.mxu0 %v3968_v61  ;;  %2841 = vmatpush2.bf16.msra.mxu1 %v4052_v11  ;;  %v4025_v61 = vld [vmem:[%s5573_s5 + $0x8] ss:$28 sps:$4 sm:$0xff]   ;;  %v1330_v11 = vcombine.high %v5033_v24, %v5033_v24 }
 0x15e   :  { %2801 = vmatprep.subr.bf16.mxu0 %v3973_v0  ;;  %2842 = vmatprep.subr.bf16.mxu1 %v4060_v17  ;;  %v4039_v0 = vld [vmem:[%s5573_s5 + $0x31c] ss:$28 sps:$4 sm:$0xff]  }
 0x15f   :  { %v1353_v17 = vpack.i.b16 %v1330_v11, %v1330_v11  ;;  %v4127_v11 = vld [vmem:[%s5573_s5 + $0x358] ss:$28 sps:$4 sm:$0xff]  }
 0x161   :  { %2802 = vmatpush2.bf16.msra.mxu0 %v3971_v1  ;;  %2843 = vmatpush2.bf16.msra.mxu1 %v4058_v14  ;;  %v4037_v1 = vld [vmem:[%s5573_s5 + $0x318] ss:$28 sps:$4 sm:$0xff]   ;;  %v4069_v14 = vld [vmem:[%s5573_s5 + $0x204] ss:$28 sps:$4 sm:$0xff]   ;;  %v1358_v26 = vrot.slane %v1353_v17, %v4624_v50 }
 0x162   :  { %2803 = vmatprep.subr.bf16.mxu0 %v3976_v5  ;;  %2844 = vmatprep.subr.bf16.mxu1 %v4066_v18  ;;  %v4051_v5 = vld [vmem:[%s5573_s5 + $0x2ac] ss:$28 sps:$4 sm:$0xff]   ;;  %v4133_v17 = vld [vmem:[%s5573_s5 + $0x320] ss:$28 sps:$4 sm:$0xff]  }
 0x165   :  { %2804 = vmatpush2.bf16.msra.mxu0 %v3974_v6  ;;  %2845 = vmatpush2.bf16.msra.mxu1 %v4064_v19  ;;  %v4049_v6 = vld [vmem:[%s5573_s5 + $0x2a8] ss:$28 sps:$4 sm:$0xff]  }
 0x166   :  { %2805 = vmatprep.subr.bf16.mxu0 %v3979_v9  ;;  %2846 = vmatprep.subr.bf16.mxu1 %v4072_v20  ;;  %v1329_v9 = vcombine.high %v5030_v16, %v5030_v16  ;;  %v4075_v16 = vld [vmem:[%s5573_s5 + $0x1cc] ss:$28 sps:$4 sm:$0xff]  }
 0x169   :  { %2806 = vmatpush2.bf16.msra.mxu0 %v3977_v10  ;;  %2847 = vmatpush2.bf16.msra.mxu1 %v4070_v21  ;;  %v4063_v10 = vld [vmem:[%s5573_s5 + $0x23c] ss:$28 sps:$4 sm:$0xff]  }
 0x16a   :  { %2857 = vmatprep.subr.bf16.mxu0 %v3985_v13  ;;  %2898 = vmatprep.subr.bf16.mxu1 %v4078_v22  ;;  %v1346_v13 = vpack.i.b16 %v1329_v9, %v1329_v9  ;;  %v4067_v21 = vld [vmem:[%s5573_s5 + $0x200] ss:$28 sps:$4 sm:$0xff]  }
 0x16b   :  { %v4129_v9 = vld [vmem:[%s5573_s5 + $0x35c] ss:$28 sps:$4 sm:$0xff]  }
 0x16c   :  { %v1351_v22 = vrot.slane %v1346_v13, %v4624_v50  ;;  %v4135_v13 = vld [vmem:[%s5573_s5 + $0x324] ss:$28 sps:$4 sm:$0xff]  }
 0x1ac   :  { %v1171_v27 = vpop.f32.mrf.mxu0  ;;  %v1212_v28 = vpop.f32.mrf.mxu1 }
 0x1ad   :  { %v1213_v29 = vadd.f32 %v1212_v28, %v1171_v27 }
 0x1ae   :  { %v1173_v31 = vpop.f32.mrf.mxu0  ;;  %v1214_v32 = vpop.f32.mrf.mxu1 }
 0x1af   :  { %v1301_v33 = vpack.c.bf16 %v1213_v29, %v1213_v29  ;;  %v1215_v34 = vadd.f32 %v1214_v32, %v1173_v31 }
 0x1b0   :  { %v1175_v36 = vpop.f32.mrf.mxu0  ;;  %v1216_v37 = vpop.f32.mrf.mxu1 }
 0x1b1   :  { %v1302_v38 = vpack.c.bf16 %v1215_v34, %v1215_v34  ;;  %v1359_v39 = vadd.bf16 %v1337_v30, %v1301_v33  ;;  %v4073_v30 = vld [vmem:[%s5573_s5 + $0x1c8] ss:$28 sps:$4 sm:$0xff]   ;;  %v4081_v34 = vld [vmem:[%s5573_s5 + $0x19c] ss:$28 sps:$4 sm:$0xff]   ;;  %v4076_v37 = vld [vmem:[%s5573_s5 + $0x510] ss:$28 sps:$4 sm:$0xff]  }
 0x1b2   :  { %v1176_v40 = vpop.f32.mrf.mxu0  ;;  %v1217_v41 = vpop.f32.mrf.mxu1 }
 0x1b3   :  { %v1360_v42 = vadd.bf16 %v1344_v35, %v1302_v38  ;;  %v5048_v46 = vmax.bf16 %v4275_v2, %v1359_v39  ;;  %v4079_v39 = vld [vmem:[%s5573_s5 + $0x198] ss:$28 sps:$4 sm:$0xff]   ;;  %v4087_v41 = vld [vmem:[%s5573_s5 + $0x164] ss:$28 sps:$4 sm:$0xff]  }
 0x1b4   :  { %v4084_v40 = vld [vmem:[%s5573_s5 + $0x4dc] ss:$28 sps:$4 sm:$0xff]  }
 0x1b5   :  { %v5042_v44 = vmax.bf16 %v4275_v2, %v1360_v42  ;;  %v4085_v42 = vld [vmem:[%s5573_s5 + $0x160] ss:$28 sps:$4 sm:$0xff]  }
 0x1b7   :  { %2807 = vmatprep.mubr.bf16.mxu0 %v5042_v44 }
 0x1b8   :  { %2808 = vmatmul.mubr.bf16.vlgmr.msra.gmra.mxu0 %v5048_v46 }
 0x1b9   :  { %2858 = vmatpush1.bf16.msra.mxu0 %v3983_v45  ;;  %2889 = vmatprep.mubr.bf16.mxu0 %v5042_v44  ;;  %v4090_v45 = vld [vmem:[%s5573_s5 + $0x4a4] ss:$28 sps:$4 sm:$0xff]  }
 0x1ba   :  { %2859 = vmatprep.subr.bf16.mxu0 %v3991_v47  ;;  %v4093_v47 = vld [vmem:[%s5573_s5 + $0x12c] ss:$28 sps:$4 sm:$0xff]  }
 0x1bd   :  { %2860 = vmatpush1.bf16.msra.mxu0 %v3989_v48  ;;  %v4088_v48 = vld [vmem:[%s5573_s5 + $0x4a0] ss:$28 sps:$4 sm:$0xff]  }
 0x1be   :  { %2861 = vmatprep.subr.bf16.mxu0 %v3997_v49  ;;  %v4091_v49 = vld [vmem:[%s5573_s5 + $0x128] ss:$28 sps:$4 sm:$0xff]  }
 0x1c1   :  { %2862 = vmatpush1.bf16.msra.mxu0 %v3995_v51  ;;  %v4096_v51 = vld [vmem:[%s5573_s5 + $0x46c] ss:$28 sps:$4 sm:$0xff]  }
 0x1c2   :  { %2863 = vmatprep.subr.bf16.mxu0 %v4003_v52  ;;  %v4099_v52 = vld [vmem:[%s5573_s5 + $0xf4] ss:$28 sps:$4 sm:$0xff]  }
 0x1c5   :  { %2864 = vmatpush1.bf16.msra.mxu0 %v4001_v53  ;;  %v4094_v53 = vld [vmem:[%s5573_s5 + $0x468] ss:$28 sps:$4 sm:$0xff]  }
 0x1c6   :  { %2865 = vmatprep.subr.bf16.mxu0 %v4009_v54  ;;  %v4097_v54 = vld [vmem:[%s5573_s5 + $0xf0] ss:$28 sps:$4 sm:$0xff]  }
 0x1c9   :  { %2866 = vmatpush1.bf16.msra.mxu0 %v4007_v55  ;;  %v4102_v55 = vld [vmem:[%s5573_s5 + $0x434] ss:$28 sps:$4 sm:$0xff]  }
 0x1ca   :  { %2867 = vmatprep.subr.bf16.mxu0 %v4015_v56  ;;  %v4105_v56 = vld [vmem:[%s5573_s5 + $0xbc] ss:$28 sps:$4 sm:$0xff]  }
 0x1cd   :  { %2868 = vmatpush1.bf16.msra.mxu0 %v4013_v57  ;;  %v4100_v57 = vld [vmem:[%s5573_s5 + $0x430] ss:$28 sps:$4 sm:$0xff]  }
 0x1ce   :  { %2869 = vmatprep.subr.bf16.mxu0 %v4021_v58  ;;  %v4103_v58 = vld [vmem:[%s5573_s5 + $0xb8] ss:$28 sps:$4 sm:$0xff]  }
 0x1d1   :  { %2870 = vmatpush1.bf16.msra.mxu0 %v4019_v59  ;;  %v4108_v59 = vld [vmem:[%s5573_s5 + $0x3fc] ss:$28 sps:$4 sm:$0xff]  }
 0x1d2   :  { %2871 = vmatprep.subr.bf16.mxu0 %v4027_v60  ;;  %v4111_v60 = vld [vmem:[%s5573_s5 + $0x84] ss:$28 sps:$4 sm:$0xff]  }
 0x1d5   :  { %2872 = vmatpush1.bf16.msra.mxu0 %v4025_v61  ;;  %v4106_v61 = vld [vmem:[%s5573_s5 + $0x3f8] ss:$28 sps:$4 sm:$0xff]  }
 0x1d6   :  { %2873 = vmatprep.subr.bf16.mxu0 %v4033_v62  ;;  %v4109_v62 = vld [vmem:[%s5573_s5 + $0x80] ss:$28 sps:$4 sm:$0xff]  }
 0x1d9   :  { %2874 = vmatpush2.bf16.msra.mxu0 %v4031_v63  ;;  %v4114_v63 = vld [vmem:[%s5573_s5 + $0x3c4] ss:$28 sps:$4 sm:$0xff]  }
 0x1da   :  { %2875 = vmatprep.subr.bf16.mxu0 %v4039_v0  ;;  %v4117_v0 = vld [vmem:[%s5573_s5 + $0x4c] ss:$28 sps:$4 sm:$0xff]  }
 0x1dd   :  { %2876 = vmatpush2.bf16.msra.mxu0 %v4037_v1  ;;  %v4112_v1 = vld [vmem:[%s5573_s5 + $0x3c0] ss:$28 sps:$4 sm:$0xff]  }
 0x1de   :  { %2877 = vmatprep.subr.bf16.mxu0 %v4045_v3  ;;  %v4115_v3 = vld [vmem:[%s5573_s5 + $0x48] ss:$28 sps:$4 sm:$0xff]  }
 0x1e1   :  { %2878 = vmatpush2.bf16.msra.mxu0 %v4043_v4  ;;  %v4120_v4 = vld [vmem:[%s5573_s5 + $0x38c] ss:$28 sps:$4 sm:$0xff]  }
 0x1e2   :  { %2879 = vmatprep.subr.bf16.mxu0 %v4051_v5  ;;  %v4123_v5 = vld [vmem:[%s5573_s5 + $0x14] ss:$28 sps:$4 sm:$0xff]  }
 0x1e5   :  { %2880 = vmatpush2.bf16.msra.mxu0 %v4049_v6  ;;  %v4118_v6 = vld [vmem:[%s5573_s5 + $0x388] ss:$28 sps:$4 sm:$0xff]  }
 0x1e6   :  { %2881 = vmatprep.subr.bf16.mxu0 %v4057_v7  ;;  %v4121_v7 = vld [vmem:[%s5573_s5 + $0x10] ss:$28 sps:$4 sm:$0xff]  }
 0x1e9   :  { %2882 = vmatpush2.bf16.msra.mxu0 %v4055_v8  ;;  %v4126_v8 = vld [vmem:[%s5573_s5 + $0x6d4] ss:$28 sps:$4 sm:$0xff]  }
 0x1ea   :  { %2883 = vmatprep.subr.bf16.mxu0 %v4063_v10  ;;  %v4124_v10 = vld [vmem:[%s5573_s5 + $0x6d0] ss:$28 sps:$4 sm:$0xff]  }
 0x1ec   :  { %v1253_v18 = vpop.f32.mrf.mxu0  ;;  %v1294_v19 = vpop.f32.mrf.mxu1 }
 0x1ed   :  { %v1295_v20 = vadd.f32 %v1294_v19, %v1253_v18  ;;  %2884 = vmatpush2.bf16.msra.mxu0 %v4061_v12  ;;  %v4132_v12 = vld [vmem:[%s5573_s5 + $0x69c] ss:$28 sps:$4 sm:$0xff]   ;;  %v4138_v18 = vld [vmem:[%s5573_s5 + $0x664] ss:$28 sps:$4 sm:$0xff]   ;;  %v4141_v19 = vld [vmem:[%s5573_s5 + $0x2ec] ss:$28 sps:$4 sm:$0xff]  }
 0x1ee   :  { %v1255_v23 = vpop.f32.mrf.mxu0  ;;  %v1296_v15 = vpop.f32.mrf.mxu1  ;;  %2885 = vmatprep.subr.bf16.mxu0 %v4069_v14  ;;  %v4130_v14 = vld [vmem:[%s5573_s5 + $0x698] ss:$28 sps:$4 sm:$0xff]  }
 0x1ef   :  { %v1303_v24 = vpack.c.bf16 %v1295_v20, %v1295_v20  ;;  %v1297_v25 = vadd.f32 %v1296_v15, %v1255_v23  ;;  %v4136_v20 = vld [vmem:[%s5573_s5 + $0x660] ss:$28 sps:$4 sm:$0xff]   ;;  %v4147_v23 = vld [vmem:[%s5573_s5 + $0x2b4] ss:$28 sps:$4 sm:$0xff]   ;;  %v4142_v15 = vld [vmem:[%s5573_s5 + $0x628] ss:$28 sps:$4 sm:$0xff]  }
 0x1f0   :  { %v1257_v27 = vpop.f32.mrf.mxu0  ;;  %v1298_v28 = vpop.f32.mrf.mxu1 }
 0x1f1   :  { %v1304_v29 = vpack.c.bf16 %v1297_v25, %v1297_v25  ;;  %2886 = vmatpush2.bf16.msra.mxu0 %v4067_v21  ;;  %v1361_v31 = vadd.bf16 %v1351_v22, %v1303_v24  ;;  %v4139_v21 = vld [vmem:[%s5573_s5 + $0x2e8] ss:$28 sps:$4 sm:$0xff]   ;;  %v4150_v24 = vld [vmem:[%s5573_s5 + $0x5f4] ss:$28 sps:$4 sm:$0xff]   ;;  %v4153_v25 = vld [vmem:[%s5573_s5 + $0x27c] ss:$28 sps:$4 sm:$0xff]  }
 0x1f2   :  { %v1258_v32 = vpop.f32.mrf.mxu0  ;;  %v1299_v33 = vpop.f32.mrf.mxu1  ;;  %2887 = vmatprep.subr.bf16.mxu0 %v4075_v16  ;;  %v4144_v22 = vld [vmem:[%s5573_s5 + $0x62c] ss:$28 sps:$4 sm:$0xff]   ;;  %v4151_v27 = vld [vmem:[%s5573_s5 + $0x278] ss:$28 sps:$4 sm:$0xff]  }
 0x1f3   :  { %v1362_v35 = vadd.bf16 %v1358_v26, %v1304_v29  ;;  %v5159_v38 = vmax.bf16 %v4275_v2, %v1361_v31  ;;  %v4145_v16 = vld [vmem:[%s5573_s5 + $0x2b0] ss:$28 sps:$4 sm:$0xff]   ;;  %v4156_v28 = vld [vmem:[%s5573_s5 + $0x5bc] ss:$28 sps:$4 sm:$0xff]   ;;  %v4159_v29 = vld [vmem:[%s5573_s5 + $0x244] ss:$28 sps:$4 sm:$0xff]  }
 0x1f4   :  { %v4148_v26 = vld [vmem:[%s5573_s5 + $0x5f0] ss:$28 sps:$4 sm:$0xff]   ;;  %v4157_v31 = vld [vmem:[%s5573_s5 + $0x240] ss:$28 sps:$4 sm:$0xff]  }
 0x1f5   :  { %v5153_v36 = vmax.bf16 %v4275_v2, %v1362_v35  ;;  %2888 = vmatpush2.bf16.msra.mxu0 %v4073_v30  ;;  %v4082_v2 = vld [vmem:[%s5573_s5 + $0x4d8] ss:$28 sps:$4 sm:$0xff]   ;;  %v4162_v32 = vld [vmem:[%s5573_s5 + $0x584] ss:$28 sps:$4 sm:$0xff]   ;;  %v4165_v33 = vld [vmem:[%s5573_s5 + $0x20c] ss:$28 sps:$4 sm:$0xff]  }
 0x1f6   :  { %2939 = vmatprep.subr.bf16.mxu0 %v4081_v34  ;;  %v4154_v30 = vld [vmem:[%s5573_s5 + $0x5b8] ss:$28 sps:$4 sm:$0xff]   ;;  %v4160_v34 = vld [vmem:[%s5573_s5 + $0x580] ss:$28 sps:$4 sm:$0xff]   ;;  %v4163_v35 = vld [vmem:[%s5573_s5 + $0x208] ss:$28 sps:$4 sm:$0xff]  }
 0x1f7   :  { %2848 = vmatprep.mubr.bf16.mxu1 %v5153_v36 }
 0x1f8   :  { %2849 = vmatmul.mubr.bf16.vlgmr.msra.gmra.mxu1 %v5159_v38  ;;  %2890 = vmatmul.mubr.bf16.vlgmr.msra.gmra.mxu0 %v5048_v46 }
 0x1f9   :  { %2899 = vmatpush1.bf16.msra.mxu1 %v4076_v37  ;;  %2930 = vmatprep.mubr.bf16.mxu1 %v5153_v36  ;;  %v4168_v37 = vld [vmem:[%s5573_s5 + $0x54c] ss:$28 sps:$4 sm:$0xff]  }
 0x1fa   :  { %2940 = vmatpush1.bf16.msra.mxu0 %v4079_v39  ;;  %2971 = vmatprep.mubr.bf16.mxu0 %v5042_v44  ;;  %v4171_v39 = vld [vmem:[%s5573_s5 + $0x1d4] ss:$28 sps:$4 sm:$0xff]  }
 0x1fb   :  { %2900 = vmatprep.subr.bf16.mxu1 %v4084_v40  ;;  %2941 = vmatprep.subr.bf16.mxu0 %v4087_v41  ;;  %v4166_v40 = vld [vmem:[%s5573_s5 + $0x548] ss:$28 sps:$4 sm:$0xff]   ;;  %v4169_v41 = vld [vmem:[%s5573_s5 + $0x1d0] ss:$28 sps:$4 sm:$0xff]  }
 0x1fd   :  { %2901 = vmatpush1.bf16.msra.mxu1 %v4082_v2  ;;  %v4174_v2 = vld [vmem:[%s5573_s5 + $0x51c] ss:$28 sps:$4 sm:$0xff]  }
 0x1fe   :  { %2942 = vmatpush1.bf16.msra.mxu0 %v4085_v42  ;;  %2902 = vmatprep.subr.bf16.mxu1 %v4090_v45  ;;  %v4175_v42 = vld [vmem:[%s5573_s5 + $0x360] ss:$28 sps:$4 sm:$0xff]   ;;  %v4172_v45 = vld [vmem:[%s5573_s5 + $0x518] ss:$28 sps:$4 sm:$0xff]  }
 0x1ff   :  { %2943 = vmatprep.subr.bf16.mxu0 %v4093_v47  ;;  %v4176_v47 = vld [vmem:[%s5573_s5 + $0x1a0] ss:$28 sps:$4 sm:$0xff]  }
 0x201   :  { %2903 = vmatpush1.bf16.msra.mxu1 %v4088_v48  ;;  %v4179_v48 = vld [vmem:[%s5573_s5 + $0x4e4] ss:$28 sps:$4 sm:$0xff]  }
 0x202   :  { %2944 = vmatpush1.bf16.msra.mxu0 %v4091_v49  ;;  %2904 = vmatprep.subr.bf16.mxu1 %v4096_v51  ;;  %v4180_v49 = vld [vmem:[%s5573_s5 + $0x328] ss:$28 sps:$4 sm:$0xff]   ;;  %v4177_v51 = vld [vmem:[%s5573_s5 + $0x4e0] ss:$28 sps:$4 sm:$0xff]  }
 0x203   :  { %2945 = vmatprep.subr.bf16.mxu0 %v4099_v52  ;;  %v4181_v52 = vld [vmem:[%s5573_s5 + $0x168] ss:$28 sps:$4 sm:$0xff]  }
 0x205   :  { %2905 = vmatpush1.bf16.msra.mxu1 %v4094_v53  ;;  %v4184_v53 = vld [vmem:[%s5573_s5 + $0x4ac] ss:$28 sps:$4 sm:$0xff]  }
 0x206   :  { %2946 = vmatpush1.bf16.msra.mxu0 %v4097_v54  ;;  %2906 = vmatprep.subr.bf16.mxu1 %v4102_v55  ;;  %v4185_v54 = vld [vmem:[%s5573_s5 + $0x2f0] ss:$28 sps:$4 sm:$0xff]   ;;  %v4182_v55 = vld [vmem:[%s5573_s5 + $0x4a8] ss:$28 sps:$4 sm:$0xff]  }
 0x207   :  { %2947 = vmatprep.subr.bf16.mxu0 %v4105_v56  ;;  %v4186_v56 = vld [vmem:[%s5573_s5 + $0x130] ss:$28 sps:$4 sm:$0xff]  }
 0x209   :  { %2907 = vmatpush1.bf16.msra.mxu1 %v4100_v57  ;;  %v4190_v57 = vld [vmem:[%s5573_s5 + $0x2b8] ss:$28 sps:$4 sm:$0xff]  }
 0x20a   :  { %2948 = vmatpush1.bf16.msra.mxu0 %v4103_v58  ;;  %2908 = vmatprep.subr.bf16.mxu1 %v4108_v59  ;;  %v4187_v58 = vld [vmem:[%s5573_s5 + $0x470] ss:$28 sps:$4 sm:$0xff]   ;;  %v4191_v59 = vld [vmem:[%s5573_s5 + $0xf8] ss:$28 sps:$4 sm:$0xff]  }
 0x20b   :  { %2949 = vmatprep.subr.bf16.mxu0 %v4111_v60  ;;  %v4194_v60 = vld [vmem:[%s5573_s5 + $0x43c] ss:$28 sps:$4 sm:$0xff]  }
 0x20d   :  { %2909 = vmatpush1.bf16.msra.mxu1 %v4106_v61  ;;  %v4195_v61 = vld [vmem:[%s5573_s5 + $0x280] ss:$28 sps:$4 sm:$0xff]  }
 0x20e   :  { %2950 = vmatpush1.bf16.msra.mxu0 %v4109_v62  ;;  %2910 = vmatprep.subr.bf16.mxu1 %v4114_v63  ;;  %v4192_v62 = vld [vmem:[%s5573_s5 + $0x438] ss:$28 sps:$4 sm:$0xff]   ;;  %v4196_v63 = vld [vmem:[%s5573_s5 + $0xc0] ss:$28 sps:$4 sm:$0xff]  }
 0x20f   :  { %2951 = vmatprep.subr.bf16.mxu0 %v4117_v0  ;;  %v4199_v0 = vld [vmem:[%s5573_s5 + $0x404] ss:$28 sps:$4 sm:$0xff]  }
 0x211   :  { %2911 = vmatpush1.bf16.msra.mxu1 %v4112_v1  ;;  %v4200_v1 = vld [vmem:[%s5573_s5 + $0x248] ss:$28 sps:$4 sm:$0xff]  }
 0x212   :  { %2952 = vmatpush1.bf16.msra.mxu0 %v4115_v3  ;;  %2912 = vmatprep.subr.bf16.mxu1 %v4120_v4  ;;  %v4197_v3 = vld [vmem:[%s5573_s5 + $0x400] ss:$28 sps:$4 sm:$0xff]   ;;  %v4201_v4 = vld [vmem:[%s5573_s5 + $0x88] ss:$28 sps:$4 sm:$0xff]  }
 0x213   :  { %2953 = vmatprep.subr.bf16.mxu0 %v4123_v5  ;;  %v4204_v5 = vld [vmem:[%s5573_s5 + $0x3cc] ss:$28 sps:$4 sm:$0xff]  }
 0x215   :  { %2913 = vmatpush1.bf16.msra.mxu1 %v4118_v6  ;;  %v4205_v6 = vld [vmem:[%s5573_s5 + $0x210] ss:$28 sps:$4 sm:$0xff]  }
 0x216   :  { %2954 = vmatpush1.bf16.msra.mxu0 %v4121_v7  ;;  %2914 = vmatprep.subr.bf16.mxu1 %v4126_v8  ;;  %v4202_v7 = vld [vmem:[%s5573_s5 + $0x3c8] ss:$28 sps:$4 sm:$0xff]   ;;  %v4206_v8 = vld [vmem:[%s5573_s5 + $0x50] ss:$28 sps:$4 sm:$0xff]  }
 0x217   :  { %2955 = vmatprep.subr.bf16.mxu0 %v4129_v9  ;;  %v4209_v9 = vld [vmem:[%s5573_s5 + $0x394] ss:$28 sps:$4 sm:$0xff]  }
 0x219   :  { %2915 = vmatpush2.bf16.msra.mxu1 %v4124_v10  ;;  %v4210_v10 = vld [vmem:[%s5573_s5 + $0x1d8] ss:$28 sps:$4 sm:$0xff]  }
 0x21a   :  { %2956 = vmatpush2.bf16.msra.mxu0 %v4127_v11  ;;  %2916 = vmatprep.subr.bf16.mxu1 %v4132_v12  ;;  %v4207_v11 = vld [vmem:[%s5573_s5 + $0x390] ss:$28 sps:$4 sm:$0xff]   ;;  %v4211_v12 = vld [vmem:[%s5573_s5 + $0x18] ss:$28 sps:$4 sm:$0xff]  }
 0x21b   :  { %2957 = vmatprep.subr.bf16.mxu0 %v4135_v13  ;;  %v4214_v13 = vld [vmem:[%s5573_s5 + $0x6dc] ss:$28 sps:$4 sm:$0xff]  }
 0x21d   :  { %2917 = vmatpush2.bf16.msra.mxu1 %v4130_v14  ;;  %v4212_v14 = vld [vmem:[%s5573_s5 + $0x6d8] ss:$28 sps:$4 sm:$0xff]  }
 0x21e   :  { %2958 = vmatpush2.bf16.msra.mxu0 %v4133_v17  ;;  %2918 = vmatprep.subr.bf16.mxu1 %v4138_v18  ;;  %v4217_v17 = vld [vmem:[%s5573_s5 + $0x6a4] ss:$28 sps:$4 sm:$0xff]  }
 0x21f   :  { %2959 = vmatprep.subr.bf16.mxu0 %v4141_v19  ;;  %v4215_v18 = vld [vmem:[%s5573_s5 + $0x6a0] ss:$28 sps:$4 sm:$0xff]   ;;  %v4220_v19 = vld [vmem:[%s5573_s5 + $0x66c] ss:$28 sps:$4 sm:$0xff]  }
 0x221   :  { %2919 = vmatpush2.bf16.msra.mxu1 %v4136_v20  ;;  %v4218_v20 = vld [vmem:[%s5573_s5 + $0x668] ss:$28 sps:$4 sm:$0xff]  }
 0x222   :  { %2960 = vmatpush2.bf16.msra.mxu0 %v4139_v21  ;;  %2920 = vmatprep.subr.bf16.mxu1 %v4144_v22  ;;  %v4223_v21 = vld [vmem:[%s5573_s5 + $0x634] ss:$28 sps:$4 sm:$0xff]   ;;  %v4226_v22 = vld [vmem:[%s5573_s5 + $0x5fc] ss:$28 sps:$4 sm:$0xff]  }
 0x223   :  { %2961 = vmatprep.subr.bf16.mxu0 %v4147_v23  ;;  %v4224_v23 = vld [vmem:[%s5573_s5 + $0x5f8] ss:$28 sps:$4 sm:$0xff]  }
 0x225   :  { %2921 = vmatpush2.bf16.msra.mxu1 %v4142_v15  ;;  %v4229_v15 = vld [vmem:[%s5573_s5 + $0x5c4] ss:$28 sps:$4 sm:$0xff]  }
 0x226   :  { %2962 = vmatpush2.bf16.msra.mxu0 %v4145_v16  ;;  %2922 = vmatprep.subr.bf16.mxu1 %v4150_v24  ;;  %v4227_v16 = vld [vmem:[%s5573_s5 + $0x5c0] ss:$28 sps:$4 sm:$0xff]   ;;  %v4232_v24 = vld [vmem:[%s5573_s5 + $0x58c] ss:$28 sps:$4 sm:$0xff]  }
 0x227   :  { %2963 = vmatprep.subr.bf16.mxu0 %v4153_v25  ;;  %v4230_v25 = vld [vmem:[%s5573_s5 + $0x588] ss:$28 sps:$4 sm:$0xff]  }
 0x229   :  { %2923 = vmatpush2.bf16.msra.mxu1 %v4148_v26  ;;  %v4235_v26 = vld [vmem:[%s5573_s5 + $0x554] ss:$28 sps:$4 sm:$0xff]  }
 0x22a   :  { %2964 = vmatpush2.bf16.msra.mxu0 %v4151_v27  ;;  %2924 = vmatprep.subr.bf16.mxu1 %v4156_v28  ;;  %v4233_v27 = vld [vmem:[%s5573_s5 + $0x550] ss:$28 sps:$4 sm:$0xff]   ;;  %v4236_v28 = vld [vmem:[%s5573_s5 + $0x6e0] ss:$28 sps:$4 sm:$0xff]  }
 0x22b   :  { %2965 = vmatprep.subr.bf16.mxu0 %v4159_v29  ;;  %v4237_v29 = vld [vmem:[%s5573_s5 + $0x520] ss:$28 sps:$4 sm:$0xff]  }
 0x22d   :  { %2925 = vmatpush2.bf16.msra.mxu1 %v4154_v30  ;;  %v4238_v30 = vld [vmem:[%s5573_s5 + $0x6a8] ss:$28 sps:$4 sm:$0xff]  }
 0x22e   :  { %2966 = vmatpush2.bf16.msra.mxu0 %v4157_v31  ;;  %2926 = vmatprep.subr.bf16.mxu1 %v4162_v32  ;;  %v4239_v32 = vld [vmem:[%s5573_s5 + $0x4e8] ss:$28 sps:$4 sm:$0xff]  }
 0x22f   :  { %2967 = vmatprep.subr.bf16.mxu0 %v4165_v33 }
 0x231   :  { %2927 = vmatpush2.bf16.msra.mxu1 %v4160_v34  ;;  %v4240_v34 = vld [vmem:[%s5573_s5 + $0x670] ss:$28 sps:$4 sm:$0xff]  }
 0x232   :  { %2968 = vmatpush2.bf16.msra.mxu0 %v4163_v35  ;;  %2928 = vmatprep.subr.bf16.mxu1 %v4168_v37  ;;  %v4241_v37 = vld [vmem:[%s5573_s5 + $0x4b0] ss:$28 sps:$4 sm:$0xff]  }
 0x233   :  { %2969 = vmatprep.subr.bf16.mxu0 %v4171_v39 }
 0x235   :  { %2929 = vmatpush2.bf16.msra.mxu1 %v4166_v40  ;;  %v4243_v40 = vld [vmem:[%s5573_s5 + $0x478] ss:$28 sps:$4 sm:$0xff]  }
 0x236   :  { %2970 = vmatpush2.bf16.msra.mxu0 %v4169_v41  ;;  %2980 = vmatprep.subr.bf16.mxu1 %v4174_v2  ;;  %v4244_v41 = vld [vmem:[%s5573_s5 + $0x600] ss:$28 sps:$4 sm:$0xff]  }
 0x237   :  { %3645 = vmatprep.subr.bf16.mxu0 %v4175_v42  ;;  %v4245_v2 = vld [vmem:[%s5573_s5 + $0x440] ss:$28 sps:$4 sm:$0xff]   ;;  %v4246_v42 = vld [vmem:[%s5573_s5 + $0x5c8] ss:$28 sps:$4 sm:$0xff]  }
 0x238   :  { %2931 = vmatmul.mubr.bf16.vlgmr.msra.gmra.mxu1 %v5159_v38 }
 0x239   :  { %2972 = vmatmul.mubr.bf16.vlgmr.msra.gmra.mxu0 %v5048_v46  ;;  %2981 = vmatpush1.bf16.msra.mxu1 %v4172_v45  ;;  %v4247_v45 = vld [vmem:[%s5573_s5 + $0x408] ss:$28 sps:$4 sm:$0xff]  }
 0x23a   :  { %3012 = vmatprep.mubr.bf16.mxu1 %v5153_v36  ;;  %3646 = vmatpush3.bf16.msra.mxu0 %v4176_v47  ;;  %v4248_v47 = vld [vmem:[%s5573_s5 + $0x590] ss:$28 sps:$4 sm:$0xff]  }
 0x23b   :  { %3053 = vmatprep.mubr.bf16.mxu0 %v5042_v44  ;;  %2982 = vmatprep.subr.bf16.mxu1 %v4179_v48  ;;  %v4189_v44 = vld [vmem:[%s5573_s5 + $0x474] ss:$28 sps:$4 sm:$0xff]  }
 0x23c   :  { %3647 = vmatprep.subr.bf16.mxu0 %v4180_v49  ;;  %v4249_v48 = vld [vmem:[%s5573_s5 + $0x3d0] ss:$28 sps:$4 sm:$0xff]   ;;  %v4250_v49 = vld [vmem:[%s5573_s5 + $0x558] ss:$28 sps:$4 sm:$0xff]  }
 0x23d   :  { %2983 = vmatpush1.bf16.msra.mxu1 %v4177_v51  ;;  %v4251_v51 = vld [vmem:[%s5573_s5 + $0x398] ss:$28 sps:$4 sm:$0xff]  }
 0x23e   :  { %3648 = vmatpush3.bf16.msra.mxu0 %v4181_v52  ;;  %2984 = vmatprep.subr.bf16.mxu1 %v4184_v53  ;;  %v3108_v52 = vld [vmem:[%s5574_s6] sm:$0x7f] }
 0x23f   :  { %3649 = vmatprep.subr.bf16.mxu0 %v4185_v54  ;;  %v3117_v53 = vrot.slane %v3108_v52, %v4620_v43 }
 0x241   :  { %2985 = vmatpush1.bf16.msra.mxu1 %v4182_v55  ;;  %v3125_v54 = vcombine.high %v3117_v53, %v3117_v53  ;;  %v3133_v55 = vrot.slane %v3117_v53, %v4620_v43 }
 0x242   :  { %3650 = vmatpush3.bf16.msra.mxu0 %v4186_v56  ;;  %2986 = vmatprep.subr.bf16.mxu1 %v4189_v44 }
 0x243   :  { %3651 = vmatprep.subr.bf16.mxu0 %v4190_v57  ;;  %v3147_v56 = vrot.slane %v3125_v54, %v4620_v43  ;;  %v3159_v44 = vpack.i.b16 %v3133_v55, %v3133_v55 }
 0x245   :  { %2987 = vmatpush1.bf16.msra.mxu1 %v4187_v58  ;;  %v3166_v57 = vpack.i.b16 %v3147_v56, %v3147_v56 }
 0x246   :  { %3652 = vmatpush3.bf16.msra.mxu0 %v4191_v59  ;;  %2988 = vmatprep.subr.bf16.mxu1 %v4194_v60 }
 0x247   :  { %3653 = vmatprep.subr.bf16.mxu0 %v4195_v61 }
 0x249   :  { %2989 = vmatpush1.bf16.msra.mxu1 %v4192_v62 }
 0x24a   :  { %3654 = vmatpush3.bf16.msra.mxu0 %v4196_v63  ;;  %2990 = vmatprep.subr.bf16.mxu1 %v4199_v0 }
 0x24b   :  { %3655 = vmatprep.subr.bf16.mxu0 %v4200_v1  ;;  %v3171_v1 = vrot.slane %v3166_v57, %v4624_v50 }
 0x24d   :  { %2991 = vmatpush1.bf16.msra.mxu1 %v4197_v3 }
 0x24e   :  { %3656 = vmatpush3.bf16.msra.mxu0 %v4201_v4  ;;  %2992 = vmatprep.subr.bf16.mxu1 %v4204_v5 }
 0x24f   :  { %3657 = vmatprep.subr.bf16.mxu0 %v4205_v6 }
 0x251   :  { %2993 = vmatpush1.bf16.msra.mxu1 %v4202_v7 }
 0x252   :  { %3658 = vmatpush3.bf16.msra.mxu0 %v4206_v8  ;;  %2994 = vmatprep.subr.bf16.mxu1 %v4209_v9 }
 0x253   :  { %3659 = vmatprep.subr.bf16.mxu0 %v4210_v10 }
 0x255   :  { %2995 = vmatpush1.bf16.msra.mxu1 %v4207_v11  ;;  %v3155_v11 = vcombine.high %v3133_v55, %v3133_v55 }
 0x256   :  { %3660 = vmatpush3.bf16.msra.mxu0 %v4211_v12  ;;  %2996 = vmatprep.subr.bf16.mxu1 %v4214_v13  ;;  %v3157_v12 = vcombine.high %v3147_v56, %v3147_v56 }
 0x257   :  { %v3173_v13 = vpack.i.b16 %v3155_v11, %v3155_v11 }
 0x259   :  { %2997 = vmatpush2.bf16.msra.mxu1 %v4212_v14  ;;  %3054 = vmatmul.mubr.bf16.vlgmr.msra.gmra.mxu0 %v5048_v46  ;;  %v4221_v46 = vld [vmem:[%s5573_s5 + $0x630] ss:$28 sps:$4 sm:$0xff]   ;;  %v3180_v14 = vpack.i.b16 %v3157_v12, %v3157_v12 }
 0x25a   :  { %2998 = vmatprep.subr.bf16.mxu1 %v4217_v17 }
 0x25d   :  { %2999 = vmatpush2.bf16.msra.mxu1 %v4215_v18 }
 0x25e   :  { %3000 = vmatprep.subr.bf16.mxu1 %v4220_v19 }
 0x261   :  { %3001 = vmatpush2.bf16.msra.mxu1 %v4218_v20 }
 0x262   :  { %3002 = vmatprep.subr.bf16.mxu1 %v4223_v21 }
 0x265   :  { %3003 = vmatpush2.bf16.msra.mxu1 %v4221_v46  ;;  %v3178_v46 = vrot.slane %v3173_v13, %v4624_v50 }
 0x266   :  { %3004 = vmatprep.subr.bf16.mxu1 %v4226_v22 }
 0x269   :  { %3005 = vmatpush2.bf16.msra.mxu1 %v4224_v23  ;;  %v3185_v23 = vrot.slane %v3180_v14, %v4624_v50 }
 0x26a   :  { %3006 = vmatprep.subr.bf16.mxu1 %v4229_v15 }
 0x26d   :  { %3007 = vmatpush2.bf16.msra.mxu1 %v4227_v16 }
 0x26e   :  { %3008 = vmatprep.subr.bf16.mxu1 %v4232_v24 }
 0x271   :  { %3009 = vmatpush2.bf16.msra.mxu1 %v4230_v25 }
 0x272   :  { %3010 = vmatprep.subr.bf16.mxu1 %v4235_v26 }
 0x275   :  { %3011 = vmatpush2.bf16.msra.mxu1 %v4233_v27 }
 0x276   :  { %3667 = vmatprep.subr.bf16.mxu1 %v4236_v28 }
 0x278   :  { %3013 = vmatmul.mubr.bf16.vlgmr.msra.gmra.mxu1 %v5159_v38  ;;  %v2809_v31 = vpop.f32.mrf.mxu0 }
 0x279   :  { %3668 = vmatpush3.bf16.msra.mxu1 %v4237_v29  ;;  %3093 = vmatprep.mubr.bf16.mxu1 %v5153_v36  ;;  %v4242_v36 = vld [vmem:[%s5573_s5 + $0x638] ss:$28 sps:$4 sm:$0xff]   ;;  %s4277_s5 = smov [#allocation2]  }
 0x27a   :  { %v2811_v33 = vpop.f32.mrf.mxu0  ;;  %3669 = vmatprep.subr.bf16.mxu1 %v4238_v30  ;;  %s3247_s6 = sshll.u32 %s4277_s5, 4  ;;  %s3248_s6 = int_to_ptr.vmem [resolvable:$true] %s3247_s6 }
 0x27b   :  { %s4253_s29 = scalar_lea.vmem %s3248_s6, 448  ;;  %p4258_p1 = scmp.lt.s32.totalorder %s3248_s6, %s3248_s6 }
 0x27c   :  { %v2813_v35 = vpop.f32.mrf.mxu0  ;;  %p4254_p0 = scmp.ne.s32.totalorder %s3248_s6, %s4253_s29  ;;  %p4259_p2 = scmp.lt.s32.totalorder %s4253_s29, %s4253_s29 }
 0x27d   :  { %3670 = vmatpush3.bf16.msra.mxu1 %v4239_v32  ;;  %v3110_v35 = vcombine.high %v3108_v52, %v3108_v52 }
 0x27e   :  { %v2814_v39 = vpop.f32.mrf.mxu0  ;;  %3671 = vmatprep.subr.bf16.mxu1 %v4240_v34  ;;  %p4260_p3 = por %p4259_p2, %p4258_p1 }
 0x280   :  { %p4261_p4 = pnand %p4260_p3, %p4254_p0 }
 0x281   :  { %3672 = vmatpush3.bf16.msra.mxu1 %v4241_v37  ;;  %v3124_v37 = vrot.slane %v3110_v35, %v4620_v43 }
 0x282   :  { %3673 = vmatprep.subr.bf16.mxu1 %v4242_v36 }
 0x283   :  { %v3126_v39 = vcombine.high %v3124_v37, %v3124_v37  ;;  %v3140_v36 = vrot.slane %v3124_v37, %v4620_v43 }
 0x285   :  { %3674 = vmatpush3.bf16.msra.mxu1 %v4243_v40  ;;  %v3154_v40 = vrot.slane %v3126_v39, %v4620_v43 }
 0x286   :  { %3675 = vmatprep.subr.bf16.mxu1 %v4244_v41  ;;  %v3187_v41 = vpack.i.b16 %v3140_v36, %v3140_v36 }
 0x289   :  { %3676 = vmatpush3.bf16.msra.mxu1 %v4245_v2  ;;  %v3194_v2 = vpack.i.b16 %v3154_v40, %v3154_v40 }
 0x28a   :  { %3677 = vmatprep.subr.bf16.mxu1 %v4246_v42 }
 0x28b   :  { %v3199_v53 = vrot.slane %v3194_v2, %v4624_v50 }
 0x28d   :  { %3678 = vmatpush3.bf16.msra.mxu1 %v4247_v45 }
 0x28e   :  { %3679 = vmatprep.subr.bf16.mxu1 %v4248_v47 }
 0x291   :  { %3680 = vmatpush3.bf16.msra.mxu1 %v4249_v48 }
 0x292   :  { %3681 = vmatprep.subr.bf16.mxu1 %v4250_v49  ;;  %v3192_v49 = vrot.slane %v3187_v41, %v4624_v50 }
 0x295   :  { %3682 = vmatpush3.bf16.msra.mxu1 %v4251_v51 }
 0x298   :  { %3094 = vmatmul.mubr.bf16.vlgmr.msra.gmra.mxu1 %v5159_v38  ;;  %v3164_v38 = vrot.slane %v3159_v44, %v4624_v50 }
 0x2b8   :  { %v2850_v58 = vpop.f32.mrf.mxu1  ;;  %v2891_v59 = vpop.f32.mrf.mxu0 }
 0x2b9   :  { %v2851_v60 = vadd.f32 %v2850_v58, %v2809_v31  ;;  %v3156_v58 = vcombine.high %v3140_v36, %v3140_v36 }
 0x2ba   :  { %v2852_v61 = vpop.f32.mrf.mxu1  ;;  %v2893_v62 = vpop.f32.mrf.mxu0 }
 0x2bb   :  { %v3101_v63 = vpack.c.bf16 %v2851_v60, %v2851_v60  ;;  %v2853_v0 = vadd.f32 %v2852_v61, %v2811_v33 }
 0x2bc   :  { %v2854_v3 = vpop.f32.mrf.mxu1  ;;  %v2895_v4 = vpop.f32.mrf.mxu0 }
 0x2bd   :  { %v3102_v5 = vpack.c.bf16 %v2853_v0, %v2853_v0  ;;  %v3207_v8 = vadd.bf16 %v3164_v38, %v3101_v63 }
 0x2be   :  { %v2855_v6 = vpop.f32.mrf.mxu1  ;;  %v2896_v7 = vpop.f32.mrf.mxu0 }
 0x2bf   :  { %v3208_v9 = vadd.bf16 %v3171_v1, %v3102_v5 }
 0x2c1   :  { %v3641_v10 = vcombine.low %v3207_v8, %v3208_v9 }
 0x2c3   :  { %3236 = vst [vmem:[#allocation2] sm:$0xff] %v3641_v10 }
 0x2f8   :  { %v2932_v17 = vpop.f32.mrf.mxu1 }
 0x2f9   :  { %v2933_v18 = vadd.f32 %v2932_v17, %v2891_v59  ;;  %v2973_v19 = vpop.f32.mrf.mxu0  ;;  %v3201_v59 = vpack.i.b16 %v3156_v58, %v3156_v58 }
 0x2fa   :  { %v2934_v20 = vpop.f32.mrf.mxu1 }
 0x2fb   :  { %v3103_v21 = vpack.c.bf16 %v2933_v18, %v2933_v18  ;;  %v2935_v22 = vadd.f32 %v2934_v20, %v2893_v62  ;;  %v2975_v15 = vpop.f32.mrf.mxu0  ;;  %v3206_v0 = vrot.slane %v3201_v59, %v4624_v50 }
 0x2fc   :  { %v2936_v16 = vpop.f32.mrf.mxu1 }
 0x2fd   :  { %v3104_v24 = vpack.c.bf16 %v2935_v22, %v2935_v22  ;;  %v2977_v25 = vpop.f32.mrf.mxu0  ;;  %v3209_v27 = vadd.bf16 %v3178_v46, %v3103_v21 }
 0x2fe   :  { %v2937_v26 = vpop.f32.mrf.mxu1 }
 0x2ff   :  { %v3210_v28 = vadd.bf16 %v3185_v23, %v3104_v24  ;;  %v2978_v29 = vpop.f32.mrf.mxu0 }
 0x301   :  { %v3642_v30 = vcombine.low %v3209_v27, %v3210_v28 }
 0x303   :  { %3237 = vst [vmem:[#allocation2 + $0x8] sm:$0xff] %v3642_v30 }
 0x319   :  { %v3661_v31 = vpop.f32.mrf.mxu0 }
 0x31b   :  { %v3662_v32 = vpop.f32.mrf.mxu0 }
 0x31c   :  { %v3663_v61 = vadd.f32 %v3662_v32, %v3661_v31 }
 0x31d   :  { %v3664_v33 = vpop.f32.mrf.mxu0 }
 0x31f   :  { %v3665_v34 = vpop.f32.mrf.mxu0 }
 0x338   :  { %v3014_v42 = vpop.f32.mrf.mxu1 }
 0x339   :  { %v3015_v45 = vadd.f32 %v3014_v42, %v2973_v19 }
 0x33a   :  { %v3016_v47 = vpop.f32.mrf.mxu1 }
 0x33b   :  { %v3105_v48 = vpack.c.bf16 %v3015_v45, %v3015_v45  ;;  %v3017_v51 = vadd.f32 %v3016_v47, %v2975_v15 }
 0x33c   :  { %v3018_v54 = vpop.f32.mrf.mxu1 }
 0x33d   :  { %v3106_v52 = vpack.c.bf16 %v3017_v51, %v3017_v51  ;;  %v3211_v56 = vadd.bf16 %v3192_v49, %v3105_v48 }
 0x33e   :  { %v3019_v55 = vpop.f32.mrf.mxu1 }
 0x33f   :  { %v3212_v44 = vadd.bf16 %v3199_v53, %v3106_v52 }
 0x341   :  { %v3643_v57 = vcombine.low %v3211_v56, %v3212_v44 }
 0x343   :  { %3238 = vst [vmem:[#allocation2 + $0x10] sm:$0xff] %v3643_v57 }
 0x358   :  { %v3683_v43 = vpop.f32.mrf.mxu1 }
 0x35a   :  { %v3684_v60 = vpop.f32.mrf.mxu1 }
 0x35b   :  { %v3685_v62 = vadd.f32 %v3684_v60, %v3683_v43 }
 0x35c   :  { %v3686_v63 = vpop.f32.mrf.mxu1 }
 0x35d   :  { %v3096_v38 = vadd.f32 %v3685_v62, %v3663_v61 }
 0x35e   :  { %v3687_v1 = vpop.f32.mrf.mxu1 }
 0x35f   :  { %v3107_v3 = vpack.c.bf16 %v3096_v38, %v3096_v38 }
 0x361   :  { %v3213_v4 = vadd.bf16 %v3206_v0, %v3107_v3 }
 0x363   :  { %v3644_v5 = vcombine.low %v3213_v4, %v3213_v4 }
 0x365   :  { %3240 = vst.msk [vmem:[#allocation2 + $0x18] sm:$0xf] %vm3239_vm0, %v3644_v5 }
 0x366   :  { %4264 = shalt.err (!%p4261_p4)
}
 0x367   :  { %3250 = dma.vmem_to_hbm [thread:$0]  %s3248_s6, 448, %s5575_s7, [#allocation3]  }
 0x368   :  { %4273 = dma.done.wait [#allocation3], 448  }
 0x369   :  { %4274 = vsyncadd [#allocation3], 4294966848 }
 0x36a   :  { %3254 = vsyncpa [#allocation3], 1 }

</bundles_post_ra>
